<compile_context>
chip_gen: v6e
topology: v6e:2x2x1
jax: 0.10.0
libtpu: 0.0.40
codegen_flags: <defaults>
</compile_context>

<pallas_src>
import functools

import jax
import jax.numpy as jnp
from jax import lax
from jax.experimental import pallas as pl
from jax.experimental.pallas import tpu as pltpu

EPS = 1e-5


def _resblock_kernel(x_ref, w1_ref, w2_ref, bn_ref, o_ref, *, H, W):
    # x_ref : (N, CB, H*W) VMEM   input block (also the residual)
    # w1_ref: (9, CB, 1)  VMEM    conv1 depthwise taps, k = kh*3 + kw
    # w2_ref: (9, CB, 1)  VMEM    conv2 depthwise taps
    # bn_ref: (4, CB, 1)  VMEM    rows: gamma1, beta1, gamma2, beta2
    # o_ref : (N, CB, H*W) VMEM
    N, CB, HW = x_ref.shape

    x = x_ref[...]
    w1 = w1_ref[...]
    w2 = w2_ref[...]
    bn = bn_ref[...]

    # Flattened spatial position p = h*W + w (shared by both convs).
    pos = lax.broadcasted_iota(jnp.int32, (1, 1, HW), 2)
    col = pos % W

    # Precompute the 9 (roll shift, boundary mask) pairs once.
    taps = []
    for kh in range(3):
        dh = kh - 1
        for kw in range(3):
            dw = kw - 1
            s = dh * W + dw
            if dh == 0 and dw == 0:
                taps.append((0, None))
            else:
                valid = ((col + dw >= 0) & (col + dw < W) &
                         (pos + dh * W >= 0) & (pos + dh * W < HW))
                taps.append((s, valid))

    def dwconv3x3(v, wt):
        # out[p] = sum_k v[p + s_k] * wt[k]   (zero outside the image)
        acc = None
        for k, (s, valid) in enumerate(taps):
            sh = v if s == 0 else pltpu.roll(v, (-s) % HW, axis=2)
            if valid is not None:
                sh = jnp.where(valid, sh, 0.0)
            term = sh * wt[k]                       # wt[k]: (CB, 1) broadcast
            acc = term if acc is None else acc + term
        return acc

    inv_cnt = 1.0 / float(N * HW)

    def batchnorm(v, gamma, beta):
        # Training-mode BN: biased batch stats over (N, H, W), single fused pass.
        s1 = jnp.sum(jnp.sum(v, axis=2, keepdims=True), axis=0, keepdims=True)
        s2 = jnp.sum(jnp.sum(v * v, axis=2, keepdims=True), axis=0, keepdims=True)
        mean = s1 * inv_cnt
        var = jnp.maximum(s2 * inv_cnt - mean * mean, 0.0)
        return (v - mean) * lax.rsqrt(var + EPS) * gamma + beta

    y = jnp.maximum(batchnorm(dwconv3x3(x, w1), bn[0], bn[1]), 0.0)
    z = batchnorm(dwconv3x3(y, w2), bn[2], bn[3])
    o_ref[...] = jnp.maximum(z + x, 0.0)


def _pick_channel_block(C, N, HW):
    """Channels per grid step: prefer full-sublane multiples of 8 that still give
    >=2 grid steps (megacore sharding / pipelining) and keep a double-buffered
    f32 (N, CB, HW) block comfortably inside VMEM (also on v7x's 64 MiB)."""
    budget = 4 * 1024 * 1024  # bytes per block
    for cb in (64, 32, 16, 8):
        if C % cb == 0 and C // cb >= 2 and N * cb * HW * 4 <= budget:
            return cb
    return C  # small channel counts: one block for the whole channel axis


@jax.jit
def resblock_pallas(x, w1, w2, g1, b1, g2, b2):
    """x: (N, C, H, W) f32; w1, w2: (C, 1, 3, 3) depthwise taps; g*, b*: (C,)."""
    N, C, H, W = x.shape
    HW = H * W

    xf = x.reshape(N, C, HW).astype(jnp.float32)                 # free reshape, no transpose
    w1v = w1.reshape(C, 9).T.reshape(9, C, 1).astype(jnp.float32)
    w2v = w2.reshape(C, 9).T.reshape(9, C, 1).astype(jnp.float32)
    bnv = jnp.stack([g1, b1, g2, b2], axis=0).reshape(4, C, 1).astype(jnp.float32)

    CB = _pick_channel_block(C, N, HW)
    grid = (C // CB,)

    out = pl.pallas_call(
        functools.partial(_resblock_kernel, H=H, W=W),
        out_shape=jax.ShapeDtypeStruct((N, C, HW), jnp.float32),
        grid=grid,
        in_specs=[
            pl.BlockSpec((N, CB, HW), lambda i: (0, i, 0)),
            pl.BlockSpec((9, CB, 1), lambda i: (0, i, 0)),
            pl.BlockSpec((9, CB, 1), lambda i: (0, i, 0)),
            pl.BlockSpec((4, CB, 1), lambda i: (0, i, 0)),
        ],
        out_specs=pl.BlockSpec((N, CB, HW), lambda i: (0, i, 0)),
        compiler_params=pltpu.CompilerParams(
            dimension_semantics=("parallel",),
            vmem_limit_bytes=32 * 1024 * 1024,
        ),
    )(xf, w1v, w2v, bnv)

    return out.reshape(N, C, H, W)                               # free reshape back


def resblock_reference(x, w1, w2, g1, b1, g2, b2):
    """Pure-JAX reference mirroring the PyTorch module (training-mode BN, shortcut=None)."""
    C = x.shape[1]

    def dwconv(inp, w):
        return lax.conv_general_dilated(
            inp, w, window_strides=(1, 1), padding=((1, 1), (1, 1)),
            dimension_numbers=("NCHW", "OIHW", "NCHW"),
            feature_group_count=C)

    def bn(inp, g, b):
        mu = jnp.mean(inp, axis=(0, 2, 3), keepdims=True)
        var = jnp.mean((inp - mu) ** 2, axis=(0, 2, 3), keepdims=True)
        return (inp - mu) / jnp.sqrt(var + EPS) * g.reshape(1, -1, 1, 1) + b.reshape(1, -1, 1, 1)

    y = jax.nn.relu(bn(dwconv(x, w1), g1, b1))
    y = bn(dwconv(y, w2), g2, b2)
    return jax.nn.relu(y + x)


if __name__ == "__main__":
    N, C, H, W = 2, 4, 16, 16  # inchannel == outchannel (required by the residual add)
    key = jax.random.PRNGKey(0)
    kx, kw1, kw2, kg1, kb1, kg2, kb2 = jax.random.split(key, 7)

    x = jax.random.normal(kx, (N, C, H, W), dtype=jnp.float32)
    # depthwise conv weights: (outchannel, inchannel/groups=1, 3, 3)
    w1 = jax.random.normal(kw1, (C, 1, 3, 3), dtype=jnp.float32) * 0.3
    w2 = jax.random.normal(kw2, (C, 1, 3, 3), dtype=jnp.float32) * 0.3
    # BatchNorm affine params
    g1 = 1.0 + 0.1 * jax.random.normal(kg1, (C,), dtype=jnp.float32)
    b1 = 0.1 * jax.random.normal(kb1, (C,), dtype=jnp.float32)
    g2 = 1.0 + 0.1 * jax.random.normal(kg2, (C,), dtype=jnp.float32)
    b2 = 0.1 * jax.random.normal(kb2, (C,), dtype=jnp.float32)

    out = jax.block_until_ready(resblock_pallas(x, w1, w2, g1, b1, g2, b2))
    ref = resblock_reference(x, w1, w2, g1, b1, g2, b2)

    assert out.shape == (N, C, H, W)
    err = float(jnp.max(jnp.abs(out - ref)))
    assert jnp.allclose(out, ref, atol=5e-4, rtol=5e-4), f"max abs err = {err}"

    print("KERNEL_OK")
</pallas_src>

<mosaic_0001>
module attributes {stable_mosaic.version = 11 : i64} {
  func.func @_resblock_kernel(%arg0: i32, %arg1: memref<2x4x256xf32, #tpu.memory_space<vmem>>, %arg2: memref<9x4x1xf32, #tpu.memory_space<vmem>>, %arg3: memref<9x4x1xf32, #tpu.memory_space<vmem>>, %arg4: memref<4x4x1xf32, #tpu.memory_space<vmem>>, %arg5: memref<2x4x256xf32, #tpu.memory_space<vmem>>) attributes {dimension_semantics = [#tpu.dimension_semantics<parallel>], iteration_bounds = array<i64: 1>, scalar_prefetch = 0 : i64, scratch_operands = 0 : i64, tpu.core_type = #tpu.core_type<tc>, window_params = [{transform_indices = @transform_0, window_bounds = array<i64: 2, 4, 256>}, {transform_indices = @transform_1, window_bounds = array<i64: 9, 4, 1>}, {transform_indices = @transform_2, window_bounds = array<i64: 9, 4, 1>}, {transform_indices = @transform_3, window_bounds = array<i64: 4, 4, 1>}, {transform_indices = @transform_4, window_bounds = array<i64: 2, 4, 256>}]} {
    %c0 = arith.constant 0 : index
    %c0_0 = arith.constant 0 : index
    %c0_1 = arith.constant 0 : index
    %0 = vector.load %arg1[%c0, %c0_0, %c0_1] : memref<2x4x256xf32, #tpu.memory_space<vmem>>, vector<2x4x256xf32>
    %c0_2 = arith.constant 0 : index
    %c0_3 = arith.constant 0 : index
    %c0_4 = arith.constant 0 : index
    %1 = vector.load %arg2[%c0_2, %c0_3, %c0_4] : memref<9x4x1xf32, #tpu.memory_space<vmem>>, vector<9x4x1xf32>
    %c0_5 = arith.constant 0 : index
    %c0_6 = arith.constant 0 : index
    %c0_7 = arith.constant 0 : index
    %2 = vector.load %arg3[%c0_5, %c0_6, %c0_7] : memref<9x4x1xf32, #tpu.memory_space<vmem>>, vector<9x4x1xf32>
    %c0_8 = arith.constant 0 : index
    %c0_9 = arith.constant 0 : index
    %c0_10 = arith.constant 0 : index
    %3 = vector.load %arg4[%c0_8, %c0_9, %c0_10] : memref<4x4x1xf32, #tpu.memory_space<vmem>>, vector<4x4x1xf32>
    %4 = tpu.iota {dimensions = array<i32: 2>} : vector<1x1x256xi32>
    %c16_i32 = arith.constant 16 : i32
    %c0_i32 = arith.constant 0 : i32
    %5 = arith.cmpi eq, %c16_i32, %c0_i32 : i32
    %c1_i32 = arith.constant 1 : i32
    %6 = arith.select %5, %c1_i32, %c16_i32 : i32
    %7 = vector.broadcast %6 : i32 to vector<1x1x256xi32>
    %8 = arith.remsi %4, %7 : vector<1x1x256xi32>
    %c0_i32_11 = arith.constant 0 : i32
    %9 = vector.broadcast %c0_i32_11 : i32 to vector<1x1x256xi32>
    %10 = arith.cmpi ne, %8, %9 : vector<1x1x256xi32>
    %c0_i32_12 = arith.constant 0 : i32
    %11 = vector.broadcast %c0_i32_12 : i32 to vector<1x1x256xi32>
    %12 = arith.cmpi slt, %8, %11 : vector<1x1x256xi32>
    %c0_i32_13 = arith.constant 0 : i32
    %13 = arith.cmpi slt, %6, %c0_i32_13 : i32
    %14 = vector.broadcast %13 : i1 to vector<1x1x256xi1>
    %15 = vector.broadcast %14 : vector<1x1x256xi1> to vector<1x1x256xi1>
    %16 = arith.xori %12, %15 : vector<1x1x256xi1>
    %17 = arith.andi %16, %10 : vector<1x1x256xi1>
    %18 = vector.broadcast %6 : i32 to vector<1x1x256xi32>
    %19 = arith.addi %8, %18 : vector<1x1x256xi32>
    %20 = arith.select %17, %19, %8 : vector<1x1x256xi1>, vector<1x1x256xi32>
    %c-1_i32 = arith.constant -1 : i32
    %21 = vector.broadcast %c-1_i32 : i32 to vector<1x1x256xi32>
    %22 = arith.addi %20, %21 : vector<1x1x256xi32>
    %c0_i32_14 = arith.constant 0 : i32
    %23 = vector.broadcast %c0_i32_14 : i32 to vector<1x1x256xi32>
    %24 = arith.cmpi sge, %22, %23 : vector<1x1x256xi32>
    %c-1_i32_15 = arith.constant -1 : i32
    %25 = vector.broadcast %c-1_i32_15 : i32 to vector<1x1x256xi32>
    %26 = arith.addi %20, %25 : vector<1x1x256xi32>
    %c16_i32_16 = arith.constant 16 : i32
    %27 = vector.broadcast %c16_i32_16 : i32 to vector<1x1x256xi32>
    %28 = arith.cmpi slt, %26, %27 : vector<1x1x256xi32>
    %29 = arith.andi %24, %28 : vector<1x1x256xi1>
    %c-16_i32 = arith.constant -16 : i32
    %30 = vector.broadcast %c-16_i32 : i32 to vector<1x1x256xi32>
    %31 = arith.addi %4, %30 : vector<1x1x256xi32>
    %c0_i32_17 = arith.constant 0 : i32
    %32 = vector.broadcast %c0_i32_17 : i32 to vector<1x1x256xi32>
    %33 = arith.cmpi sge, %31, %32 : vector<1x1x256xi32>
    %34 = arith.andi %29, %33 : vector<1x1x256xi1>
    %c-16_i32_18 = arith.constant -16 : i32
    %35 = vector.broadcast %c-16_i32_18 : i32 to vector<1x1x256xi32>
    %36 = arith.addi %4, %35 : vector<1x1x256xi32>
    %c256_i32 = arith.constant 256 : i32
    %37 = vector.broadcast %c256_i32 : i32 to vector<1x1x256xi32>
    %38 = arith.cmpi slt, %36, %37 : vector<1x1x256xi32>
    %39 = arith.andi %34, %38 : vector<1x1x256xi1>
    %c0_i32_19 = arith.constant 0 : i32
    %40 = vector.broadcast %c0_i32_19 : i32 to vector<1x1x256xi32>
    %41 = arith.addi %20, %40 : vector<1x1x256xi32>
    %c0_i32_20 = arith.constant 0 : i32
    %42 = vector.broadcast %c0_i32_20 : i32 to vector<1x1x256xi32>
    %43 = arith.cmpi sge, %41, %42 : vector<1x1x256xi32>
    %c0_i32_21 = arith.constant 0 : i32
    %44 = vector.broadcast %c0_i32_21 : i32 to vector<1x1x256xi32>
    %45 = arith.addi %20, %44 : vector<1x1x256xi32>
    %c16_i32_22 = arith.constant 16 : i32
    %46 = vector.broadcast %c16_i32_22 : i32 to vector<1x1x256xi32>
    %47 = arith.cmpi slt, %45, %46 : vector<1x1x256xi32>
    %48 = arith.andi %43, %47 : vector<1x1x256xi1>
    %c-16_i32_23 = arith.constant -16 : i32
    %49 = vector.broadcast %c-16_i32_23 : i32 to vector<1x1x256xi32>
    %50 = arith.addi %4, %49 : vector<1x1x256xi32>
    %c0_i32_24 = arith.constant 0 : i32
    %51 = vector.broadcast %c0_i32_24 : i32 to vector<1x1x256xi32>
    %52 = arith.cmpi sge, %50, %51 : vector<1x1x256xi32>
    %53 = arith.andi %48, %52 : vector<1x1x256xi1>
    %c-16_i32_25 = arith.constant -16 : i32
    %54 = vector.broadcast %c-16_i32_25 : i32 to vector<1x1x256xi32>
    %55 = arith.addi %4, %54 : vector<1x1x256xi32>
    %c256_i32_26 = arith.constant 256 : i32
    %56 = vector.broadcast %c256_i32_26 : i32 to vector<1x1x256xi32>
    %57 = arith.cmpi slt, %55, %56 : vector<1x1x256xi32>
    %58 = arith.andi %53, %57 : vector<1x1x256xi1>
    %c1_i32_27 = arith.constant 1 : i32
    %59 = vector.broadcast %c1_i32_27 : i32 to vector<1x1x256xi32>
    %60 = arith.addi %20, %59 : vector<1x1x256xi32>
    %c0_i32_28 = arith.constant 0 : i32
    %61 = vector.broadcast %c0_i32_28 : i32 to vector<1x1x256xi32>
    %62 = arith.cmpi sge, %60, %61 : vector<1x1x256xi32>
    %c1_i32_29 = arith.constant 1 : i32
    %63 = vector.broadcast %c1_i32_29 : i32 to vector<1x1x256xi32>
    %64 = arith.addi %20, %63 : vector<1x1x256xi32>
    %c16_i32_30 = arith.constant 16 : i32
    %65 = vector.broadcast %c16_i32_30 : i32 to vector<1x1x256xi32>
    %66 = arith.cmpi slt, %64, %65 : vector<1x1x256xi32>
    %67 = arith.andi %62, %66 : vector<1x1x256xi1>
    %c-16_i32_31 = arith.constant -16 : i32
    %68 = vector.broadcast %c-16_i32_31 : i32 to vector<1x1x256xi32>
    %69 = arith.addi %4, %68 : vector<1x1x256xi32>
    %c0_i32_32 = arith.constant 0 : i32
    %70 = vector.broadcast %c0_i32_32 : i32 to vector<1x1x256xi32>
    %71 = arith.cmpi sge, %69, %70 : vector<1x1x256xi32>
    %72 = arith.andi %67, %71 : vector<1x1x256xi1>
    %c-16_i32_33 = arith.constant -16 : i32
    %73 = vector.broadcast %c-16_i32_33 : i32 to vector<1x1x256xi32>
    %74 = arith.addi %4, %73 : vector<1x1x256xi32>
    %c256_i32_34 = arith.constant 256 : i32
    %75 = vector.broadcast %c256_i32_34 : i32 to vector<1x1x256xi32>
    %76 = arith.cmpi slt, %74, %75 : vector<1x1x256xi32>
    %77 = arith.andi %72, %76 : vector<1x1x256xi1>
    %c-1_i32_35 = arith.constant -1 : i32
    %78 = vector.broadcast %c-1_i32_35 : i32 to vector<1x1x256xi32>
    %79 = arith.addi %20, %78 : vector<1x1x256xi32>
    %c0_i32_36 = arith.constant 0 : i32
    %80 = vector.broadcast %c0_i32_36 : i32 to vector<1x1x256xi32>
    %81 = arith.cmpi sge, %79, %80 : vector<1x1x256xi32>
    %c-1_i32_37 = arith.constant -1 : i32
    %82 = vector.broadcast %c-1_i32_37 : i32 to vector<1x1x256xi32>
    %83 = arith.addi %20, %82 : vector<1x1x256xi32>
    %c16_i32_38 = arith.constant 16 : i32
    %84 = vector.broadcast %c16_i32_38 : i32 to vector<1x1x256xi32>
    %85 = arith.cmpi slt, %83, %84 : vector<1x1x256xi32>
    %86 = arith.andi %81, %85 : vector<1x1x256xi1>
    %c0_i32_39 = arith.constant 0 : i32
    %87 = vector.broadcast %c0_i32_39 : i32 to vector<1x1x256xi32>
    %88 = arith.addi %4, %87 : vector<1x1x256xi32>
    %c0_i32_40 = arith.constant 0 : i32
    %89 = vector.broadcast %c0_i32_40 : i32 to vector<1x1x256xi32>
    %90 = arith.cmpi sge, %88, %89 : vector<1x1x256xi32>
    %91 = arith.andi %86, %90 : vector<1x1x256xi1>
    %c0_i32_41 = arith.constant 0 : i32
    %92 = vector.broadcast %c0_i32_41 : i32 to vector<1x1x256xi32>
    %93 = arith.addi %4, %92 : vector<1x1x256xi32>
    %c256_i32_42 = arith.constant 256 : i32
    %94 = vector.broadcast %c256_i32_42 : i32 to vector<1x1x256xi32>
    %95 = arith.cmpi slt, %93, %94 : vector<1x1x256xi32>
    %96 = arith.andi %91, %95 : vector<1x1x256xi1>
    %c1_i32_43 = arith.constant 1 : i32
    %97 = vector.broadcast %c1_i32_43 : i32 to vector<1x1x256xi32>
    %98 = arith.addi %20, %97 : vector<1x1x256xi32>
    %c0_i32_44 = arith.constant 0 : i32
    %99 = vector.broadcast %c0_i32_44 : i32 to vector<1x1x256xi32>
    %100 = arith.cmpi sge, %98, %99 : vector<1x1x256xi32>
    %c1_i32_45 = arith.constant 1 : i32
    %101 = vector.broadcast %c1_i32_45 : i32 to vector<1x1x256xi32>
    %102 = arith.addi %20, %101 : vector<1x1x256xi32>
    %c16_i32_46 = arith.constant 16 : i32
    %103 = vector.broadcast %c16_i32_46 : i32 to vector<1x1x256xi32>
    %104 = arith.cmpi slt, %102, %103 : vector<1x1x256xi32>
    %105 = arith.andi %100, %104 : vector<1x1x256xi1>
    %c0_i32_47 = arith.constant 0 : i32
    %106 = vector.broadcast %c0_i32_47 : i32 to vector<1x1x256xi32>
    %107 = arith.addi %4, %106 : vector<1x1x256xi32>
    %c0_i32_48 = arith.constant 0 : i32
    %108 = vector.broadcast %c0_i32_48 : i32 to vector<1x1x256xi32>
    %109 = arith.cmpi sge, %107, %108 : vector<1x1x256xi32>
    %110 = arith.andi %105, %109 : vector<1x1x256xi1>
    %c0_i32_49 = arith.constant 0 : i32
    %111 = vector.broadcast %c0_i32_49 : i32 to vector<1x1x256xi32>
    %112 = arith.addi %4, %111 : vector<1x1x256xi32>
    %c256_i32_50 = arith.constant 256 : i32
    %113 = vector.broadcast %c256_i32_50 : i32 to vector<1x1x256xi32>
    %114 = arith.cmpi slt, %112, %113 : vector<1x1x256xi32>
    %115 = arith.andi %110, %114 : vector<1x1x256xi1>
    %c-1_i32_51 = arith.constant -1 : i32
    %116 = vector.broadcast %c-1_i32_51 : i32 to vector<1x1x256xi32>
    %117 = arith.addi %20, %116 : vector<1x1x256xi32>
    %c0_i32_52 = arith.constant 0 : i32
    %118 = vector.broadcast %c0_i32_52 : i32 to vector<1x1x256xi32>
    %119 = arith.cmpi sge, %117, %118 : vector<1x1x256xi32>
    %c-1_i32_53 = arith.constant -1 : i32
    %120 = vector.broadcast %c-1_i32_53 : i32 to vector<1x1x256xi32>
    %121 = arith.addi %20, %120 : vector<1x1x256xi32>
    %c16_i32_54 = arith.constant 16 : i32
    %122 = vector.broadcast %c16_i32_54 : i32 to vector<1x1x256xi32>
    %123 = arith.cmpi slt, %121, %122 : vector<1x1x256xi32>
    %124 = arith.andi %119, %123 : vector<1x1x256xi1>
    %c16_i32_55 = arith.constant 16 : i32
    %125 = vector.broadcast %c16_i32_55 : i32 to vector<1x1x256xi32>
    %126 = arith.addi %4, %125 : vector<1x1x256xi32>
    %c0_i32_56 = arith.constant 0 : i32
    %127 = vector.broadcast %c0_i32_56 : i32 to vector<1x1x256xi32>
    %128 = arith.cmpi sge, %126, %127 : vector<1x1x256xi32>
    %129 = arith.andi %124, %128 : vector<1x1x256xi1>
    %c16_i32_57 = arith.constant 16 : i32
    %130 = vector.broadcast %c16_i32_57 : i32 to vector<1x1x256xi32>
    %131 = arith.addi %4, %130 : vector<1x1x256xi32>
    %c256_i32_58 = arith.constant 256 : i32
    %132 = vector.broadcast %c256_i32_58 : i32 to vector<1x1x256xi32>
    %133 = arith.cmpi slt, %131, %132 : vector<1x1x256xi32>
    %134 = arith.andi %129, %133 : vector<1x1x256xi1>
    %c0_i32_59 = arith.constant 0 : i32
    %135 = vector.broadcast %c0_i32_59 : i32 to vector<1x1x256xi32>
    %136 = arith.addi %20, %135 : vector<1x1x256xi32>
    %c0_i32_60 = arith.constant 0 : i32
    %137 = vector.broadcast %c0_i32_60 : i32 to vector<1x1x256xi32>
    %138 = arith.cmpi sge, %136, %137 : vector<1x1x256xi32>
    %c0_i32_61 = arith.constant 0 : i32
    %139 = vector.broadcast %c0_i32_61 : i32 to vector<1x1x256xi32>
    %140 = arith.addi %20, %139 : vector<1x1x256xi32>
    %c16_i32_62 = arith.constant 16 : i32
    %141 = vector.broadcast %c16_i32_62 : i32 to vector<1x1x256xi32>
    %142 = arith.cmpi slt, %140, %141 : vector<1x1x256xi32>
    %143 = arith.andi %138, %142 : vector<1x1x256xi1>
    %c16_i32_63 = arith.constant 16 : i32
    %144 = vector.broadcast %c16_i32_63 : i32 to vector<1x1x256xi32>
    %145 = arith.addi %4, %144 : vector<1x1x256xi32>
    %c0_i32_64 = arith.constant 0 : i32
    %146 = vector.broadcast %c0_i32_64 : i32 to vector<1x1x256xi32>
    %147 = arith.cmpi sge, %145, %146 : vector<1x1x256xi32>
    %148 = arith.andi %143, %147 : vector<1x1x256xi1>
    %c16_i32_65 = arith.constant 16 : i32
    %149 = vector.broadcast %c16_i32_65 : i32 to vector<1x1x256xi32>
    %150 = arith.addi %4, %149 : vector<1x1x256xi32>
    %c256_i32_66 = arith.constant 256 : i32
    %151 = vector.broadcast %c256_i32_66 : i32 to vector<1x1x256xi32>
    %152 = arith.cmpi slt, %150, %151 : vector<1x1x256xi32>
    %153 = arith.andi %148, %152 : vector<1x1x256xi1>
    %c1_i32_67 = arith.constant 1 : i32
    %154 = vector.broadcast %c1_i32_67 : i32 to vector<1x1x256xi32>
    %155 = arith.addi %20, %154 : vector<1x1x256xi32>
    %c0_i32_68 = arith.constant 0 : i32
    %156 = vector.broadcast %c0_i32_68 : i32 to vector<1x1x256xi32>
    %157 = arith.cmpi sge, %155, %156 : vector<1x1x256xi32>
    %c1_i32_69 = arith.constant 1 : i32
    %158 = vector.broadcast %c1_i32_69 : i32 to vector<1x1x256xi32>
    %159 = arith.addi %20, %158 : vector<1x1x256xi32>
    %c16_i32_70 = arith.constant 16 : i32
    %160 = vector.broadcast %c16_i32_70 : i32 to vector<1x1x256xi32>
    %161 = arith.cmpi slt, %159, %160 : vector<1x1x256xi32>
    %162 = arith.andi %157, %161 : vector<1x1x256xi1>
    %c16_i32_71 = arith.constant 16 : i32
    %163 = vector.broadcast %c16_i32_71 : i32 to vector<1x1x256xi32>
    %164 = arith.addi %4, %163 : vector<1x1x256xi32>
    %c0_i32_72 = arith.constant 0 : i32
    %165 = vector.broadcast %c0_i32_72 : i32 to vector<1x1x256xi32>
    %166 = arith.cmpi sge, %164, %165 : vector<1x1x256xi32>
    %167 = arith.andi %162, %166 : vector<1x1x256xi1>
    %c16_i32_73 = arith.constant 16 : i32
    %168 = vector.broadcast %c16_i32_73 : i32 to vector<1x1x256xi32>
    %169 = arith.addi %4, %168 : vector<1x1x256xi32>
    %c256_i32_74 = arith.constant 256 : i32
    %170 = vector.broadcast %c256_i32_74 : i32 to vector<1x1x256xi32>
    %171 = arith.cmpi slt, %169, %170 : vector<1x1x256xi32>
    %172 = arith.andi %167, %171 : vector<1x1x256xi1>
    %c17_i32 = arith.constant 17 : i32
    %173 = tpu.dynamic_rotate %0 by %c17_i32 dim 2 : vector<2x4x256xf32>, i32 -> vector<2x4x256xf32>
    %cst = arith.constant 0.000000e+00 : f32
    %174 = vector.shape_cast %39 : vector<1x1x256xi1> to vector<1x1x256xi1>
    %175 = vector.broadcast %174 : vector<1x1x256xi1> to vector<2x4x256xi1>
    %176 = vector.broadcast %cst : f32 to vector<2x4x256xf32>
    %177 = arith.select %175, %173, %176 : vector<2x4x256xi1>, vector<2x4x256xf32>
    %178 = vector.extract_strided_slice %1 {offsets = [0, 0, 0], sizes = [1, 4, 1], strides = [1, 1, 1]} : vector<9x4x1xf32> to vector<1x4x1xf32>
    %179 = vector.shape_cast %178 : vector<1x4x1xf32> to vector<4x1xf32>
    %180 = vector.shape_cast %179 : vector<4x1xf32> to vector<1x4x1xf32>
    %181 = vector.broadcast %180 : vector<1x4x1xf32> to vector<2x4x256xf32>
    %182 = arith.mulf %177, %181 : vector<2x4x256xf32>
    %c16_i32_75 = arith.constant 16 : i32
    %183 = tpu.dynamic_rotate %0 by %c16_i32_75 dim 2 : vector<2x4x256xf32>, i32 -> vector<2x4x256xf32>
    %cst_76 = arith.constant 0.000000e+00 : f32
    %184 = vector.shape_cast %58 : vector<1x1x256xi1> to vector<1x1x256xi1>
    %185 = vector.broadcast %184 : vector<1x1x256xi1> to vector<2x4x256xi1>
    %186 = vector.broadcast %cst_76 : f32 to vector<2x4x256xf32>
    %187 = arith.select %185, %183, %186 : vector<2x4x256xi1>, vector<2x4x256xf32>
    %188 = vector.extract_strided_slice %1 {offsets = [1, 0, 0], sizes = [1, 4, 1], strides = [1, 1, 1]} : vector<9x4x1xf32> to vector<1x4x1xf32>
    %189 = vector.shape_cast %188 : vector<1x4x1xf32> to vector<4x1xf32>
    %190 = vector.shape_cast %189 : vector<4x1xf32> to vector<1x4x1xf32>
    %191 = vector.broadcast %190 : vector<1x4x1xf32> to vector<2x4x256xf32>
    %192 = arith.mulf %187, %191 : vector<2x4x256xf32>
    %193 = arith.addf %182, %192 : vector<2x4x256xf32>
    %c15_i32 = arith.constant 15 : i32
    %194 = tpu.dynamic_rotate %0 by %c15_i32 dim 2 : vector<2x4x256xf32>, i32 -> vector<2x4x256xf32>
    %cst_77 = arith.constant 0.000000e+00 : f32
    %195 = vector.shape_cast %77 : vector<1x1x256xi1> to vector<1x1x256xi1>
    %196 = vector.broadcast %195 : vector<1x1x256xi1> to vector<2x4x256xi1>
    %197 = vector.broadcast %cst_77 : f32 to vector<2x4x256xf32>
    %198 = arith.select %196, %194, %197 : vector<2x4x256xi1>, vector<2x4x256xf32>
    %199 = vector.extract_strided_slice %1 {offsets = [2, 0, 0], sizes = [1, 4, 1], strides = [1, 1, 1]} : vector<9x4x1xf32> to vector<1x4x1xf32>
    %200 = vector.shape_cast %199 : vector<1x4x1xf32> to vector<4x1xf32>
    %201 = vector.shape_cast %200 : vector<4x1xf32> to vector<1x4x1xf32>
    %202 = vector.broadcast %201 : vector<1x4x1xf32> to vector<2x4x256xf32>
    %203 = arith.mulf %198, %202 : vector<2x4x256xf32>
    %204 = arith.addf %193, %203 : vector<2x4x256xf32>
    %c1_i32_78 = arith.constant 1 : i32
    %205 = tpu.dynamic_rotate %0 by %c1_i32_78 dim 2 : vector<2x4x256xf32>, i32 -> vector<2x4x256xf32>
    %cst_79 = arith.constant 0.000000e+00 : f32
    %206 = vector.shape_cast %96 : vector<1x1x256xi1> to vector<1x1x256xi1>
    %207 = vector.broadcast %206 : vector<1x1x256xi1> to vector<2x4x256xi1>
    %208 = vector.broadcast %cst_79 : f32 to vector<2x4x256xf32>
    %209 = arith.select %207, %205, %208 : vector<2x4x256xi1>, vector<2x4x256xf32>
    %210 = vector.extract_strided_slice %1 {offsets = [3, 0, 0], sizes = [1, 4, 1], strides = [1, 1, 1]} : vector<9x4x1xf32> to vector<1x4x1xf32>
    %211 = vector.shape_cast %210 : vector<1x4x1xf32> to vector<4x1xf32>
    %212 = vector.shape_cast %211 : vector<4x1xf32> to vector<1x4x1xf32>
    %213 = vector.broadcast %212 : vector<1x4x1xf32> to vector<2x4x256xf32>
    %214 = arith.mulf %209, %213 : vector<2x4x256xf32>
    %215 = arith.addf %204, %214 : vector<2x4x256xf32>
    %216 = vector.extract_strided_slice %1 {offsets = [4, 0, 0], sizes = [1, 4, 1], strides = [1, 1, 1]} : vector<9x4x1xf32> to vector<1x4x1xf32>
    %217 = vector.shape_cast %216 : vector<1x4x1xf32> to vector<4x1xf32>
    %218 = vector.shape_cast %217 : vector<4x1xf32> to vector<1x4x1xf32>
    %219 = vector.broadcast %218 : vector<1x4x1xf32> to vector<2x4x256xf32>
    %220 = arith.mulf %0, %219 : vector<2x4x256xf32>
    %221 = arith.addf %215, %220 : vector<2x4x256xf32>
    %c255_i32 = arith.constant 255 : i32
    %222 = tpu.dynamic_rotate %0 by %c255_i32 dim 2 : vector<2x4x256xf32>, i32 -> vector<2x4x256xf32>
    %cst_80 = arith.constant 0.000000e+00 : f32
    %223 = vector.shape_cast %115 : vector<1x1x256xi1> to vector<1x1x256xi1>
    %224 = vector.broadcast %223 : vector<1x1x256xi1> to vector<2x4x256xi1>
    %225 = vector.broadcast %cst_80 : f32 to vector<2x4x256xf32>
    %226 = arith.select %224, %222, %225 : vector<2x4x256xi1>, vector<2x4x256xf32>
    %227 = vector.extract_strided_slice %1 {offsets = [5, 0, 0], sizes = [1, 4, 1], strides = [1, 1, 1]} : vector<9x4x1xf32> to vector<1x4x1xf32>
    %228 = vector.shape_cast %227 : vector<1x4x1xf32> to vector<4x1xf32>
    %229 = vector.shape_cast %228 : vector<4x1xf32> to vector<1x4x1xf32>
    %230 = vector.broadcast %229 : vector<1x4x1xf32> to vector<2x4x256xf32>
    %231 = arith.mulf %226, %230 : vector<2x4x256xf32>
    %232 = arith.addf %221, %231 : vector<2x4x256xf32>
    %c241_i32 = arith.constant 241 : i32
    %233 = tpu.dynamic_rotate %0 by %c241_i32 dim 2 : vector<2x4x256xf32>, i32 -> vector<2x4x256xf32>
    %cst_81 = arith.constant 0.000000e+00 : f32
    %234 = vector.shape_cast %134 : vector<1x1x256xi1> to vector<1x1x256xi1>
    %235 = vector.broadcast %234 : vector<1x1x256xi1> to vector<2x4x256xi1>
    %236 = vector.broadcast %cst_81 : f32 to vector<2x4x256xf32>
    %237 = arith.select %235, %233, %236 : vector<2x4x256xi1>, vector<2x4x256xf32>
    %238 = vector.extract_strided_slice %1 {offsets = [6, 0, 0], sizes = [1, 4, 1], strides = [1, 1, 1]} : vector<9x4x1xf32> to vector<1x4x1xf32>
    %239 = vector.shape_cast %238 : vector<1x4x1xf32> to vector<4x1xf32>
    %240 = vector.shape_cast %239 : vector<4x1xf32> to vector<1x4x1xf32>
    %241 = vector.broadcast %240 : vector<1x4x1xf32> to vector<2x4x256xf32>
    %242 = arith.mulf %237, %241 : vector<2x4x256xf32>
    %243 = arith.addf %232, %242 : vector<2x4x256xf32>
    %c240_i32 = arith.constant 240 : i32
    %244 = tpu.dynamic_rotate %0 by %c240_i32 dim 2 : vector<2x4x256xf32>, i32 -> vector<2x4x256xf32>
    %cst_82 = arith.constant 0.000000e+00 : f32
    %245 = vector.shape_cast %153 : vector<1x1x256xi1> to vector<1x1x256xi1>
    %246 = vector.broadcast %245 : vector<1x1x256xi1> to vector<2x4x256xi1>
    %247 = vector.broadcast %cst_82 : f32 to vector<2x4x256xf32>
    %248 = arith.select %246, %244, %247 : vector<2x4x256xi1>, vector<2x4x256xf32>
    %249 = vector.extract_strided_slice %1 {offsets = [7, 0, 0], sizes = [1, 4, 1], strides = [1, 1, 1]} : vector<9x4x1xf32> to vector<1x4x1xf32>
    %250 = vector.shape_cast %249 : vector<1x4x1xf32> to vector<4x1xf32>
    %251 = vector.shape_cast %250 : vector<4x1xf32> to vector<1x4x1xf32>
    %252 = vector.broadcast %251 : vector<1x4x1xf32> to vector<2x4x256xf32>
    %253 = arith.mulf %248, %252 : vector<2x4x256xf32>
    %254 = arith.addf %243, %253 : vector<2x4x256xf32>
    %c239_i32 = arith.constant 239 : i32
    %255 = tpu.dynamic_rotate %0 by %c239_i32 dim 2 : vector<2x4x256xf32>, i32 -> vector<2x4x256xf32>
    %cst_83 = arith.constant 0.000000e+00 : f32
    %256 = vector.shape_cast %172 : vector<1x1x256xi1> to vector<1x1x256xi1>
    %257 = vector.broadcast %256 : vector<1x1x256xi1> to vector<2x4x256xi1>
    %258 = vector.broadcast %cst_83 : f32 to vector<2x4x256xf32>
    %259 = arith.select %257, %255, %258 : vector<2x4x256xi1>, vector<2x4x256xf32>
    %260 = vector.extract_strided_slice %1 {offsets = [8, 0, 0], sizes = [1, 4, 1], strides = [1, 1, 1]} : vector<9x4x1xf32> to vector<1x4x1xf32>
    %261 = vector.shape_cast %260 : vector<1x4x1xf32> to vector<4x1xf32>
    %262 = vector.shape_cast %261 : vector<4x1xf32> to vector<1x4x1xf32>
    %263 = vector.broadcast %262 : vector<1x4x1xf32> to vector<2x4x256xf32>
    %264 = arith.mulf %259, %263 : vector<2x4x256xf32>
    %265 = arith.addf %254, %264 : vector<2x4x256xf32>
    %266 = vector.extract_strided_slice %3 {offsets = [0, 0, 0], sizes = [1, 4, 1], strides = [1, 1, 1]} : vector<4x4x1xf32> to vector<1x4x1xf32>
    %267 = vector.shape_cast %266 : vector<1x4x1xf32> to vector<4x1xf32>
    %268 = vector.extract_strided_slice %3 {offsets = [1, 0, 0], sizes = [1, 4, 1], strides = [1, 1, 1]} : vector<4x4x1xf32> to vector<1x4x1xf32>
    %269 = vector.shape_cast %268 : vector<1x4x1xf32> to vector<4x1xf32>
    %cst_84 = arith.constant dense<0.000000e+00> : vector<2x4xf32>
    %270 = vector.multi_reduction <add>, %265, %cst_84 [2] : vector<2x4x256xf32> to vector<2x4xf32>
    %271 = vector.shape_cast %270 : vector<2x4xf32> to vector<2x4x1xf32>
    %cst_85 = arith.constant dense<0.000000e+00> : vector<4x1xf32>
    %272 = vector.multi_reduction <add>, %271, %cst_85 [0] : vector<2x4x1xf32> to vector<4x1xf32>
    %273 = vector.shape_cast %272 : vector<4x1xf32> to vector<1x4x1xf32>
    %274 = arith.mulf %265, %265 : vector<2x4x256xf32>
    %cst_86 = arith.constant dense<0.000000e+00> : vector<2x4xf32>
    %275 = vector.multi_reduction <add>, %274, %cst_86 [2] : vector<2x4x256xf32> to vector<2x4xf32>
    %276 = vector.shape_cast %275 : vector<2x4xf32> to vector<2x4x1xf32>
    %cst_87 = arith.constant dense<0.000000e+00> : vector<4x1xf32>
    %277 = vector.multi_reduction <add>, %276, %cst_87 [0] : vector<2x4x1xf32> to vector<4x1xf32>
    %278 = vector.shape_cast %277 : vector<4x1xf32> to vector<1x4x1xf32>
    %cst_88 = arith.constant 0.001953125 : f32
    %279 = vector.broadcast %cst_88 : f32 to vector<1x4x1xf32>
    %280 = arith.mulf %273, %279 : vector<1x4x1xf32>
    %cst_89 = arith.constant 0.001953125 : f32
    %281 = vector.broadcast %cst_89 : f32 to vector<1x4x1xf32>
    %282 = arith.mulf %278, %281 : vector<1x4x1xf32>
    %283 = arith.mulf %280, %280 : vector<1x4x1xf32>
    %284 = arith.subf %282, %283 : vector<1x4x1xf32>
    %cst_90 = arith.constant 0.000000e+00 : f32
    %285 = vector.broadcast %cst_90 : f32 to vector<1x4x1xf32>
    %286 = arith.maximumf %284, %285 : vector<1x4x1xf32>
    %287 = vector.broadcast %280 : vector<1x4x1xf32> to vector<2x4x256xf32>
    %288 = arith.subf %265, %287 : vector<2x4x256xf32>
    %cst_91 = arith.constant 9.99999974E-6 : f32
    %289 = vector.broadcast %cst_91 : f32 to vector<1x4x1xf32>
    %290 = arith.addf %286, %289 : vector<1x4x1xf32>
    %291 = math.rsqrt %290 : vector<1x4x1xf32>
    %292 = vector.broadcast %291 : vector<1x4x1xf32> to vector<2x4x256xf32>
    %293 = arith.mulf %288, %292 : vector<2x4x256xf32>
    %294 = vector.shape_cast %267 : vector<4x1xf32> to vector<1x4x1xf32>
    %295 = vector.broadcast %294 : vector<1x4x1xf32> to vector<2x4x256xf32>
    %296 = arith.mulf %293, %295 : vector<2x4x256xf32>
    %297 = vector.shape_cast %269 : vector<4x1xf32> to vector<1x4x1xf32>
    %298 = vector.broadcast %297 : vector<1x4x1xf32> to vector<2x4x256xf32>
    %299 = arith.addf %296, %298 : vector<2x4x256xf32>
    %cst_92 = arith.constant 0.000000e+00 : f32
    %300 = vector.broadcast %cst_92 : f32 to vector<2x4x256xf32>
    %301 = arith.maximumf %299, %300 : vector<2x4x256xf32>
    %c17_i32_93 = arith.constant 17 : i32
    %302 = tpu.dynamic_rotate %301 by %c17_i32_93 dim 2 : vector<2x4x256xf32>, i32 -> vector<2x4x256xf32>
    %cst_94 = arith.constant 0.000000e+00 : f32
    %303 = vector.shape_cast %39 : vector<1x1x256xi1> to vector<1x1x256xi1>
    %304 = vector.broadcast %303 : vector<1x1x256xi1> to vector<2x4x256xi1>
    %305 = vector.broadcast %cst_94 : f32 to vector<2x4x256xf32>
    %306 = arith.select %304, %302, %305 : vector<2x4x256xi1>, vector<2x4x256xf32>
    %307 = vector.extract_strided_slice %2 {offsets = [0, 0, 0], sizes = [1, 4, 1], strides = [1, 1, 1]} : vector<9x4x1xf32> to vector<1x4x1xf32>
    %308 = vector.shape_cast %307 : vector<1x4x1xf32> to vector<4x1xf32>
    %309 = vector.shape_cast %308 : vector<4x1xf32> to vector<1x4x1xf32>
    %310 = vector.broadcast %309 : vector<1x4x1xf32> to vector<2x4x256xf32>
    %311 = arith.mulf %306, %310 : vector<2x4x256xf32>
    %c16_i32_95 = arith.constant 16 : i32
    %312 = tpu.dynamic_rotate %301 by %c16_i32_95 dim 2 : vector<2x4x256xf32>, i32 -> vector<2x4x256xf32>
    %cst_96 = arith.constant 0.000000e+00 : f32
    %313 = vector.shape_cast %58 : vector<1x1x256xi1> to vector<1x1x256xi1>
    %314 = vector.broadcast %313 : vector<1x1x256xi1> to vector<2x4x256xi1>
    %315 = vector.broadcast %cst_96 : f32 to vector<2x4x256xf32>
    %316 = arith.select %314, %312, %315 : vector<2x4x256xi1>, vector<2x4x256xf32>
    %317 = vector.extract_strided_slice %2 {offsets = [1, 0, 0], sizes = [1, 4, 1], strides = [1, 1, 1]} : vector<9x4x1xf32> to vector<1x4x1xf32>
    %318 = vector.shape_cast %317 : vector<1x4x1xf32> to vector<4x1xf32>
    %319 = vector.shape_cast %318 : vector<4x1xf32> to vector<1x4x1xf32>
    %320 = vector.broadcast %319 : vector<1x4x1xf32> to vector<2x4x256xf32>
    %321 = arith.mulf %316, %320 : vector<2x4x256xf32>
    %322 = arith.addf %311, %321 : vector<2x4x256xf32>
    %c15_i32_97 = arith.constant 15 : i32
    %323 = tpu.dynamic_rotate %301 by %c15_i32_97 dim 2 : vector<2x4x256xf32>, i32 -> vector<2x4x256xf32>
    %cst_98 = arith.constant 0.000000e+00 : f32
    %324 = vector.shape_cast %77 : vector<1x1x256xi1> to vector<1x1x256xi1>
    %325 = vector.broadcast %324 : vector<1x1x256xi1> to vector<2x4x256xi1>
    %326 = vector.broadcast %cst_98 : f32 to vector<2x4x256xf32>
    %327 = arith.select %325, %323, %326 : vector<2x4x256xi1>, vector<2x4x256xf32>
    %328 = vector.extract_strided_slice %2 {offsets = [2, 0, 0], sizes = [1, 4, 1], strides = [1, 1, 1]} : vector<9x4x1xf32> to vector<1x4x1xf32>
    %329 = vector.shape_cast %328 : vector<1x4x1xf32> to vector<4x1xf32>
    %330 = vector.shape_cast %329 : vector<4x1xf32> to vector<1x4x1xf32>
    %331 = vector.broadcast %330 : vector<1x4x1xf32> to vector<2x4x256xf32>
    %332 = arith.mulf %327, %331 : vector<2x4x256xf32>
    %333 = arith.addf %322, %332 : vector<2x4x256xf32>
    %c1_i32_99 = arith.constant 1 : i32
    %334 = tpu.dynamic_rotate %301 by %c1_i32_99 dim 2 : vector<2x4x256xf32>, i32 -> vector<2x4x256xf32>
    %cst_100 = arith.constant 0.000000e+00 : f32
    %335 = vector.shape_cast %96 : vector<1x1x256xi1> to vector<1x1x256xi1>
    %336 = vector.broadcast %335 : vector<1x1x256xi1> to vector<2x4x256xi1>
    %337 = vector.broadcast %cst_100 : f32 to vector<2x4x256xf32>
    %338 = arith.select %336, %334, %337 : vector<2x4x256xi1>, vector<2x4x256xf32>
    %339 = vector.extract_strided_slice %2 {offsets = [3, 0, 0], sizes = [1, 4, 1], strides = [1, 1, 1]} : vector<9x4x1xf32> to vector<1x4x1xf32>
    %340 = vector.shape_cast %339 : vector<1x4x1xf32> to vector<4x1xf32>
    %341 = vector.shape_cast %340 : vector<4x1xf32> to vector<1x4x1xf32>
    %342 = vector.broadcast %341 : vector<1x4x1xf32> to vector<2x4x256xf32>
    %343 = arith.mulf %338, %342 : vector<2x4x256xf32>
    %344 = arith.addf %333, %343 : vector<2x4x256xf32>
    %345 = vector.extract_strided_slice %2 {offsets = [4, 0, 0], sizes = [1, 4, 1], strides = [1, 1, 1]} : vector<9x4x1xf32> to vector<1x4x1xf32>
    %346 = vector.shape_cast %345 : vector<1x4x1xf32> to vector<4x1xf32>
    %347 = vector.shape_cast %346 : vector<4x1xf32> to vector<1x4x1xf32>
    %348 = vector.broadcast %347 : vector<1x4x1xf32> to vector<2x4x256xf32>
    %349 = arith.mulf %301, %348 : vector<2x4x256xf32>
    %350 = arith.addf %344, %349 : vector<2x4x256xf32>
    %c255_i32_101 = arith.constant 255 : i32
    %351 = tpu.dynamic_rotate %301 by %c255_i32_101 dim 2 : vector<2x4x256xf32>, i32 -> vector<2x4x256xf32>
    %cst_102 = arith.constant 0.000000e+00 : f32
    %352 = vector.shape_cast %115 : vector<1x1x256xi1> to vector<1x1x256xi1>
    %353 = vector.broadcast %352 : vector<1x1x256xi1> to vector<2x4x256xi1>
    %354 = vector.broadcast %cst_102 : f32 to vector<2x4x256xf32>
    %355 = arith.select %353, %351, %354 : vector<2x4x256xi1>, vector<2x4x256xf32>
    %356 = vector.extract_strided_slice %2 {offsets = [5, 0, 0], sizes = [1, 4, 1], strides = [1, 1, 1]} : vector<9x4x1xf32> to vector<1x4x1xf32>
    %357 = vector.shape_cast %356 : vector<1x4x1xf32> to vector<4x1xf32>
    %358 = vector.shape_cast %357 : vector<4x1xf32> to vector<1x4x1xf32>
    %359 = vector.broadcast %358 : vector<1x4x1xf32> to vector<2x4x256xf32>
    %360 = arith.mulf %355, %359 : vector<2x4x256xf32>
    %361 = arith.addf %350, %360 : vector<2x4x256xf32>
    %c241_i32_103 = arith.constant 241 : i32
    %362 = tpu.dynamic_rotate %301 by %c241_i32_103 dim 2 : vector<2x4x256xf32>, i32 -> vector<2x4x256xf32>
    %cst_104 = arith.constant 0.000000e+00 : f32
    %363 = vector.shape_cast %134 : vector<1x1x256xi1> to vector<1x1x256xi1>
    %364 = vector.broadcast %363 : vector<1x1x256xi1> to vector<2x4x256xi1>
    %365 = vector.broadcast %cst_104 : f32 to vector<2x4x256xf32>
    %366 = arith.select %364, %362, %365 : vector<2x4x256xi1>, vector<2x4x256xf32>
    %367 = vector.extract_strided_slice %2 {offsets = [6, 0, 0], sizes = [1, 4, 1], strides = [1, 1, 1]} : vector<9x4x1xf32> to vector<1x4x1xf32>
    %368 = vector.shape_cast %367 : vector<1x4x1xf32> to vector<4x1xf32>
    %369 = vector.shape_cast %368 : vector<4x1xf32> to vector<1x4x1xf32>
    %370 = vector.broadcast %369 : vector<1x4x1xf32> to vector<2x4x256xf32>
    %371 = arith.mulf %366, %370 : vector<2x4x256xf32>
    %372 = arith.addf %361, %371 : vector<2x4x256xf32>
    %c240_i32_105 = arith.constant 240 : i32
    %373 = tpu.dynamic_rotate %301 by %c240_i32_105 dim 2 : vector<2x4x256xf32>, i32 -> vector<2x4x256xf32>
    %cst_106 = arith.constant 0.000000e+00 : f32
    %374 = vector.shape_cast %153 : vector<1x1x256xi1> to vector<1x1x256xi1>
    %375 = vector.broadcast %374 : vector<1x1x256xi1> to vector<2x4x256xi1>
    %376 = vector.broadcast %cst_106 : f32 to vector<2x4x256xf32>
    %377 = arith.select %375, %373, %376 : vector<2x4x256xi1>, vector<2x4x256xf32>
    %378 = vector.extract_strided_slice %2 {offsets = [7, 0, 0], sizes = [1, 4, 1], strides = [1, 1, 1]} : vector<9x4x1xf32> to vector<1x4x1xf32>
    %379 = vector.shape_cast %378 : vector<1x4x1xf32> to vector<4x1xf32>
    %380 = vector.shape_cast %379 : vector<4x1xf32> to vector<1x4x1xf32>
    %381 = vector.broadcast %380 : vector<1x4x1xf32> to vector<2x4x256xf32>
    %382 = arith.mulf %377, %381 : vector<2x4x256xf32>
    %383 = arith.addf %372, %382 : vector<2x4x256xf32>
    %c239_i32_107 = arith.constant 239 : i32
    %384 = tpu.dynamic_rotate %301 by %c239_i32_107 dim 2 : vector<2x4x256xf32>, i32 -> vector<2x4x256xf32>
    %cst_108 = arith.constant 0.000000e+00 : f32
    %385 = vector.shape_cast %172 : vector<1x1x256xi1> to vector<1x1x256xi1>
    %386 = vector.broadcast %385 : vector<1x1x256xi1> to vector<2x4x256xi1>
    %387 = vector.broadcast %cst_108 : f32 to vector<2x4x256xf32>
    %388 = arith.select %386, %384, %387 : vector<2x4x256xi1>, vector<2x4x256xf32>
    %389 = vector.extract_strided_slice %2 {offsets = [8, 0, 0], sizes = [1, 4, 1], strides = [1, 1, 1]} : vector<9x4x1xf32> to vector<1x4x1xf32>
    %390 = vector.shape_cast %389 : vector<1x4x1xf32> to vector<4x1xf32>
    %391 = vector.shape_cast %390 : vector<4x1xf32> to vector<1x4x1xf32>
    %392 = vector.broadcast %391 : vector<1x4x1xf32> to vector<2x4x256xf32>
    %393 = arith.mulf %388, %392 : vector<2x4x256xf32>
    %394 = arith.addf %383, %393 : vector<2x4x256xf32>
    %395 = vector.extract_strided_slice %3 {offsets = [2, 0, 0], sizes = [1, 4, 1], strides = [1, 1, 1]} : vector<4x4x1xf32> to vector<1x4x1xf32>
    %396 = vector.shape_cast %395 : vector<1x4x1xf32> to vector<4x1xf32>
    %397 = vector.extract_strided_slice %3 {offsets = [3, 0, 0], sizes = [1, 4, 1], strides = [1, 1, 1]} : vector<4x4x1xf32> to vector<1x4x1xf32>
    %398 = vector.shape_cast %397 : vector<1x4x1xf32> to vector<4x1xf32>
    %cst_109 = arith.constant dense<0.000000e+00> : vector<2x4xf32>
    %399 = vector.multi_reduction <add>, %394, %cst_109 [2] : vector<2x4x256xf32> to vector<2x4xf32>
    %400 = vector.shape_cast %399 : vector<2x4xf32> to vector<2x4x1xf32>
    %cst_110 = arith.constant dense<0.000000e+00> : vector<4x1xf32>
    %401 = vector.multi_reduction <add>, %400, %cst_110 [0] : vector<2x4x1xf32> to vector<4x1xf32>
    %402 = vector.shape_cast %401 : vector<4x1xf32> to vector<1x4x1xf32>
    %403 = arith.mulf %394, %394 : vector<2x4x256xf32>
    %cst_111 = arith.constant dense<0.000000e+00> : vector<2x4xf32>
    %404 = vector.multi_reduction <add>, %403, %cst_111 [2] : vector<2x4x256xf32> to vector<2x4xf32>
    %405 = vector.shape_cast %404 : vector<2x4xf32> to vector<2x4x1xf32>
    %cst_112 = arith.constant dense<0.000000e+00> : vector<4x1xf32>
    %406 = vector.multi_reduction <add>, %405, %cst_112 [0] : vector<2x4x1xf32> to vector<4x1xf32>
    %407 = vector.shape_cast %406 : vector<4x1xf32> to vector<1x4x1xf32>
    %cst_113 = arith.constant 0.001953125 : f32
    %408 = vector.broadcast %cst_113 : f32 to vector<1x4x1xf32>
    %409 = arith.mulf %402, %408 : vector<1x4x1xf32>
    %cst_114 = arith.constant 0.001953125 : f32
    %410 = vector.broadcast %cst_114 : f32 to vector<1x4x1xf32>
    %411 = arith.mulf %407, %410 : vector<1x4x1xf32>
    %412 = arith.mulf %409, %409 : vector<1x4x1xf32>
    %413 = arith.subf %411, %412 : vector<1x4x1xf32>
    %cst_115 = arith.constant 0.000000e+00 : f32
    %414 = vector.broadcast %cst_115 : f32 to vector<1x4x1xf32>
    %415 = arith.maximumf %413, %414 : vector<1x4x1xf32>
    %416 = vector.broadcast %409 : vector<1x4x1xf32> to vector<2x4x256xf32>
    %417 = arith.subf %394, %416 : vector<2x4x256xf32>
    %cst_116 = arith.constant 9.99999974E-6 : f32
    %418 = vector.broadcast %cst_116 : f32 to vector<1x4x1xf32>
    %419 = arith.addf %415, %418 : vector<1x4x1xf32>
    %420 = math.rsqrt %419 : vector<1x4x1xf32>
    %421 = vector.broadcast %420 : vector<1x4x1xf32> to vector<2x4x256xf32>
    %422 = arith.mulf %417, %421 : vector<2x4x256xf32>
    %423 = vector.shape_cast %396 : vector<4x1xf32> to vector<1x4x1xf32>
    %424 = vector.broadcast %423 : vector<1x4x1xf32> to vector<2x4x256xf32>
    %425 = arith.mulf %422, %424 : vector<2x4x256xf32>
    %426 = vector.shape_cast %398 : vector<4x1xf32> to vector<1x4x1xf32>
    %427 = vector.broadcast %426 : vector<1x4x1xf32> to vector<2x4x256xf32>
    %428 = arith.addf %425, %427 : vector<2x4x256xf32>
    %429 = arith.addf %428, %0 : vector<2x4x256xf32>
    %cst_117 = arith.constant 0.000000e+00 : f32
    %430 = vector.broadcast %cst_117 : f32 to vector<2x4x256xf32>
    %431 = arith.maximumf %429, %430 : vector<2x4x256xf32>
    %c0_118 = arith.constant 0 : index
    %c0_119 = arith.constant 0 : index
    %c0_120 = arith.constant 0 : index
    %432 = vector.load %arg5[%c0_118, %c0_119, %c0_120] : memref<2x4x256xf32, #tpu.memory_space<vmem>>, vector<2x4x256xf32>
    tpu.vector_store %arg5[%c0_118, %c0_119, %c0_120], %431 {strides = array<i32>} : memref<2x4x256xf32, #tpu.memory_space<vmem>>, vector<2x4x256xf32>,
    return
  }
  func.func @transform_0(%arg0: i32) -> (i32, i32, i32) {
    %c0_i32 = arith.constant 0 : i32
    %c0_i32_0 = arith.constant 0 : i32
    %c0_i32_1 = arith.constant 0 : i32
    return %c0_i32, %arg0, %c0_i32_0 : i32, i32, i32
  }
  func.func @transform_1(%arg0: i32) -> (i32, i32, i32) {
    %c0_i32 = arith.constant 0 : i32
    %c0_i32_0 = arith.constant 0 : i32
    %c0_i32_1 = arith.constant 0 : i32
    return %c0_i32, %arg0, %c0_i32_0 : i32, i32, i32
  }
  func.func @transform_2(%arg0: i32) -> (i32, i32, i32) {
    %c0_i32 = arith.constant 0 : i32
    %c0_i32_0 = arith.constant 0 : i32
    %c0_i32_1 = arith.constant 0 : i32
    return %c0_i32, %arg0, %c0_i32_0 : i32, i32, i32
  }
  func.func @transform_3(%arg0: i32) -> (i32, i32, i32) {
    %c0_i32 = arith.constant 0 : i32
    %c0_i32_0 = arith.constant 0 : i32
    %c0_i32_1 = arith.constant 0 : i32
    return %c0_i32, %arg0, %c0_i32_0 : i32, i32, i32
  }
  func.func @transform_4(%arg0: i32) -> (i32, i32, i32) {
    %c0_i32 = arith.constant 0 : i32
    %c0_i32_0 = arith.constant 0 : i32
    %c0_i32_1 = arith.constant 0 : i32
    return %c0_i32, %arg0, %c0_i32_0 : i32, i32, i32
  }
}

</mosaic_0001>

<bundles_post_ra>
// kernel: resblock_pallas.1
= control target key start
LH: loop header
LB: loop body
LE: loop exit
PB: predicated region body
PF: predicated region fallthrough
CT: control target
= control target key end

     0   :  { %v850_v0 = vmov 0   ;;  %s851_s27 = smov 17   ;;  %s852_s28 = smov 16   ;;  %v41_v14 = vlaneseq  ;;  %s1531_s1 = inlined_call_operand.vmem [shape: f32[9,4,1], index: 1, kind: input, shape index: {}]   ;;  %s1532_s0 = inlined_call_operand.vmem [shape: f32[2,4,256], index: 0, kind: input, shape index: {}]   ;;  %s1533_s3 = inlined_call_operand.vmem [shape: f32[4,4,1], index: 3, kind: input, shape index: {}]   ;;  %s1534_s2 = inlined_call_operand.vmem [shape: f32[9,4,1], index: 2, kind: input, shape index: {}]   ;;  %s1535_s4 = inlined_call_operand.vmem [shape: f32[2,4,256], index: 4, kind: output, shape index: {}]  }
   0x1   :  { %841 = vset.pattern.permute.xlu1 %v850_v0  ;;  %840 = vset.pattern.permute.xlu0 %v850_v0  ;;  %v21_v1 = vld [vmem:[%s1531_s1 + $0x8] sm:$0xf]  ;;  %v19_v2 = vld [vmem:[%s1531_s1] sm:$0xf]  ;;  %v23_v3 = vld [vmem:[%s1531_s1 + $0x10] sm:$0xf] }
   0x2   :  { %231 = vperm.xlu1 %841, %v21_v1   ;;  %167 = vperm.xlu0 %840, %v19_v2   ;;  %v20_v4 = vld [vmem:[%s1531_s1 + $0x4] sm:$0xf]  ;;  %v900_v5 = vld [vmem:[%s1532_s0 + $0x8] sm:$0xff]  ;;  %s853_s5 = smov 15   ;;  %s854_s6 = smov 1   ;;  %v997_v17 = vand.u32 127, %v41_v14 }
   0x3   :  { %v905_v6 = vld [vmem:[%s1532_s0] sm:$0xff]  ;;  %v913_v7 = vcombine.high %v900_v5, %v900_v5  ;;  %v22_v9 = vld [vmem:[%s1531_s1 + $0xc] sm:$0xf]  ;;  %v24_v10 = vld [vmem:[%s1531_s1 + $0x14] sm:$0xf]  ;;  %s855_s11 = smov 127  }
   0x4   :  { %v917_v8 = vcombine.high %v905_v6, %v905_v6  ;;  %v25_v11 = vld [vmem:[%s1531_s1 + $0x18] sm:$0xf]  ;;  %v26_v12 = vld [vmem:[%s1531_s1 + $0x1c] sm:$0xf]  ;;  %s856_s14 = smov 113   ;;  %s857_s17 = smov 112  }
   0x5   :  { %v27_v13 = vld [vmem:[%s1531_s1 + $0x20] sm:$0xf]  ;;  %s858_s18 = smov 111   ;;  %v1002_v20 = vadd.s32 128, %v997_v17  ;;  %v48_v21 = vand.u32 15, %v997_v17  ;;  %v1009_v26 = vadd.s32 4294967280, %v997_v17 }
   0x6   :  { %278 = vperm.xlu1 %841, %v23_v3   ;;  %197 = vperm.xlu0 %840, %v20_v4   ;;  %vm152_vm0 = vcmp.lt.s32.totalorder %v997_v17, 17  ;;  %vm182_vm5 = vcmp.lt.s32.totalorder %v997_v17, 16  ;;  %vm216_vm7 = vcmp.lt.s32.totalorder %v997_v17, 15  ;;  %vm1536_vm10 = vcmp.lt.s32.totalorder %v997_v17, 1 }
   0x7   :  { %v55_v24 = vand.u32 15, %v1002_v20  ;;  %v1006_v25 = vadd.s32 4294967295, %v48_v21  ;;  %vm78_vm2 = vcmp.ge.s32.totalorder %v1009_v26, 0  ;;  %v1034_v39 = vadd.s32 1, %v48_v21 }
   0x8   :  { %vm308_vm11 = vcmp.lt.s32.totalorder %v997_v17, 127  ;;  %vm1537_vm13 = vcmp.lt.s32.totalorder %v997_v17, 113  ;;  %vm376_vm14 = vcmp.lt.s32.totalorder %v997_v17, 112  ;;  %vm410_vm15 = vcmp.lt.s32.totalorder %v997_v17, 111 }
   0x9   :  { %v1011_v27 = vadd.s32 4294967295, %v55_v24  ;;  %vm70_vm1 = vcmp.ge.s32.totalorder %v1006_v25, 0  ;;  %v1044_v46 = vadd.s32 1, %v55_v24  ;;  %vm100_vm6 = vcmp.lt.s32.totalorder %v1034_v39, 16 }
   0xa   :  { %146 = vrot.lane.b32.xlu1 %v900_v5, %s851_s27  ;;  %144 = vrot.lane.b32.xlu0 %v905_v6, %s851_s27  ;;  %vm1023_vm4 = vmand %vm70_vm1, %vm78_vm2 }
   0xb   :  { %vm71_vm3 = vcmp.ge.s32.totalorder %v1011_v27, 0  ;;  %vm101_vm8 = vcmp.lt.s32.totalorder %v1044_v46, 16  ;;  %vm1067_vm9 = vmand %vm100_vm6, %vm78_vm2 }
   0xe   :  { %150 = vrot.lane.b32.xlu1 %v913_v7, %s851_s27  ;;  %148 = vrot.lane.b32.xlu0 %v917_v8, %s851_s27 }
  0x12   :  { %176 = vrot.lane.b32.xlu1 %v900_v5, %s852_s28  ;;  %174 = vrot.lane.b32.xlu0 %v905_v6, %s852_s28 }
  0x16   :  { %180 = vrot.lane.b32.xlu1 %v913_v7, %s852_s28  ;;  %178 = vrot.lane.b32.xlu0 %v917_v8, %s852_s28 }
  0x1a   :  { %208 = vrot.lane.b32.xlu1 %v905_v6, %s853_s5  ;;  %265 = vperm.xlu0 %840, %v22_v9  }
  0x1e   :  { %212 = vrot.lane.b32.xlu1 %v917_v8, %s853_s5  ;;  %210 = vrot.lane.b32.xlu0 %v900_v5, %s853_s5 }
  0x22   :  { %242 = vrot.lane.b32.xlu1 %v905_v6, %s854_s6  ;;  %214 = vrot.lane.b32.xlu0 %v913_v7, %s853_s5 }
  0x26   :  { %246 = vrot.lane.b32.xlu1 %v917_v8, %s854_s6  ;;  %244 = vrot.lane.b32.xlu0 %v900_v5, %s854_s6 }
  0x2a   :  { %323 = vperm.xlu1 %841, %v24_v10   ;;  %248 = vrot.lane.b32.xlu0 %v913_v7, %s854_s6 }
  0x2e   :  { %300 = vrot.lane.b32.xlu1 %v905_v6, %s855_s11  ;;  %357 = vperm.xlu0 %840, %v25_v11  }
  0x32   :  { %304 = vrot.lane.b32.xlu1 %v917_v8, %s855_s11  ;;  %302 = vrot.lane.b32.xlu0 %v900_v5, %s855_s11 }
  0x36   :  { %391 = vperm.xlu1 %841, %v26_v12   ;;  %306 = vrot.lane.b32.xlu0 %v913_v7, %s855_s11 }
  0x3a   :  { %334 = vrot.lane.b32.xlu0 %v905_v6, %s856_s14  ;;  %336 = vrot.lane.b32.xlu1 %v900_v5, %s856_s14 }
  0x3e   :  { %338 = vrot.lane.b32.xlu0 %v917_v8, %s856_s14  ;;  %340 = vrot.lane.b32.xlu1 %v913_v7, %s856_s14 }
  0x42   :  { %425 = vperm.xlu0 %840, %v27_v13   ;;  %368 = vrot.lane.b32.xlu1 %v905_v6, %s857_s17 }
  0x46   :  { %372 = vrot.lane.b32.xlu1 %v917_v8, %s857_s17  ;;  %370 = vrot.lane.b32.xlu0 %v900_v5, %s857_s17 }
  0x4a   :  { %402 = vrot.lane.b32.xlu1 %v905_v6, %s858_s18  ;;  %374 = vrot.lane.b32.xlu0 %v913_v7, %s857_s17 }
  0x4e   :  { %406 = vrot.lane.b32.xlu1 %v917_v8, %s858_s18  ;;  %404 = vrot.lane.b32.xlu0 %v900_v5, %s858_s18 }
  0x52   :  { %408 = vrot.lane.b32.xlu0 %v913_v7, %s858_s18 }
  0x7d   :  { %v994_v15 = vpop.permute.xlu1 %231  ;;  %v168_v16 = vpop.permute.xlu0 %167 }
  0x81   :  { %v999_v18 = vpop.permute.xlu1 %278  ;;  %v198_v19 = vpop.permute.xlu0 %197 }
  0x85   :  { %v147_v22 = vpop.permute.xlu1 %146  ;;  %v145_v23 = vpop.permute.xlu0 %144 }
  0x89   :  { %v151_v28 = vpop.permute.xlu1 %150  ;;  %v149_v29 = vpop.permute.xlu0 %148 }
  0x8a   :  { %v154_v30 = vsel %vm152_vm0, %v147_v22, %v151_v28  ;;  %v156_v34 = vsel %vm152_vm0, %v151_v28, %v147_v22  ;;  %v153_v48 = vsel %vm152_vm0, %v145_v23, %v149_v29  ;;  %v155_v49 = vsel %vm152_vm0, %v149_v29, %v145_v23 }
  0x8b   :  { %v164_v35 = vsel %vm71_vm3, %v154_v30, 0.0  ;;  %v163_v36 = vsel %vm1023_vm4, %v156_v34, 0.0  ;;  %v161_v57 = vsel %vm1023_vm4, %v155_v49, 0.0  ;;  %v162_v58 = vsel %vm71_vm3, %v153_v48, 0.0 }
  0x8c   :  { %v173_v43 = vmul.f32 %v168_v16, %v164_v35  ;;  %v172_v47 = vmul.f32 %v168_v16, %v163_v36  ;;  %v170_v0 = vmul.f32 %v168_v16, %v161_v57  ;;  %v171_v1 = vmul.f32 %v168_v16, %v162_v58 }
  0x8d   :  { %v177_v31 = vpop.permute.xlu1 %176  ;;  %v175_v32 = vpop.permute.xlu0 %174  ;;  %v284_v48 = vshrl.u32 %v41_v14, 7  ;;  %v1110_v58 = vadd.s32 16, %v1002_v20 }
  0x8f   :  { %vm1538_vm12 = vcmp.lt.s32.totalorder %v1110_v58, 256 }
  0x91   :  { %v181_v37 = vpop.permute.xlu1 %180  ;;  %v179_v38 = vpop.permute.xlu0 %178 }
  0x92   :  { %v184_v40 = vsel %vm182_vm5, %v177_v31, %v181_v37  ;;  %v186_v41 = vsel %vm182_vm5, %v181_v37, %v177_v31  ;;  %v185_v42 = vsel %vm182_vm5, %v179_v38, %v175_v32  ;;  %v183_v52 = vsel %vm182_vm5, %v175_v32, %v179_v38 }
  0x93   :  { %v193_v44 = vsel %vm78_vm2, %v186_v41, 0.0  ;;  %v203_v45 = vmul.f32 %v198_v19, %v184_v40  ;;  %v191_v53 = vsel %vm78_vm2, %v185_v42, 0.0  ;;  %v201_v60 = vmul.f32 %v198_v19, %v183_v52 }
  0x94   :  { %v202_v50 = vmul.f32 %v198_v19, %v193_v44  ;;  %v200_v59 = vmul.f32 %v198_v19, %v191_v53  ;;  %v859_v42 = vmov 839922192  }
  0x95   :  { %v207_v51 = vadd.f32 %v203_v45, %v173_v43  ;;  %v209_v54 = vpop.permute.xlu1 %208  ;;  %v1054_v55 = vpop.permute.xlu0 %265  ;;  %v205_v11 = vadd.f32 %v201_v60, %v171_v1  ;;  %v281_v43 = vunpack.c.l.s4 %v859_v42 }
  0x96   :  { %v206_v56 = vadd.f32 %v202_v50, %v172_v47  ;;  %v204_v10 = vadd.f32 %v200_v59, %v170_v0 }
  0x97   :  { %v282_v47 = vunpack.c.0.s8 %v281_v43 }
  0x99   :  { %v213_v62 = vpop.permute.xlu1 %212  ;;  %v211_v63 = vpop.permute.xlu0 %210  ;;  %v285_v50 = vsub.s32 %v282_v47, %v284_v48 }
  0x9a   :  { %v217_v2 = vsel %vm216_vm7, %v209_v54, %v213_v62  ;;  %v219_v3 = vsel %vm216_vm7, %v213_v62, %v209_v54 }
  0x9b   :  { %v225_v4 = vsel %vm1067_vm9, %v219_v3, 0.0  ;;  %v226_v9 = vsel %vm101_vm8, %v217_v2, 0.0  ;;  %v286_v59 = vrot.slane %v999_v18, %v285_v50 }
  0x9c   :  { %v234_v12 = vmul.f32 %v994_v15, %v225_v4  ;;  %v235_v13 = vmul.f32 %v994_v15, %v226_v9 }
  0x9d   :  { %v243_v19 = vpop.permute.xlu1 %242  ;;  %v215_v16 = vpop.permute.xlu0 %214  ;;  %v288_v3 = vmul.f32 %v286_v59, %v905_v6 }
  0x9e   :  { %v238_v21 = vadd.f32 %v234_v12, %v204_v10  ;;  %v239_v22 = vadd.f32 %v235_v13, %v205_v11  ;;  %v218_v23 = vsel %vm216_vm7, %v211_v63, %v215_v16  ;;  %v220_v24 = vsel %vm216_vm7, %v215_v16, %v211_v63 }
  0x9f   :  { %v227_v28 = vsel %vm1067_vm9, %v220_v24, 0.0  ;;  %v228_v29 = vsel %vm101_vm8, %v218_v23, 0.0 }
  0xa0   :  { %v236_v30 = vmul.f32 %v994_v15, %v227_v28  ;;  %v237_v31 = vmul.f32 %v994_v15, %v228_v29  ;;  %v292_v29 = vcombine.high %v288_v3, %v288_v3 }
  0xa1   :  { %v247_v32 = vpop.permute.xlu1 %246  ;;  %v245_v34 = vpop.permute.xlu0 %244 }
  0xa2   :  { %v240_v35 = vadd.f32 %v236_v30, %v206_v56  ;;  %v241_v36 = vadd.f32 %v237_v31, %v207_v51  ;;  %v253_v51 = vsel %vm1536_vm10, %v247_v32, %v243_v19  ;;  %v251_v54 = vsel %vm1536_vm10, %v243_v19, %v247_v32 }
  0xa3   :  { %v259_v57 = vsel %vm70_vm1, %v253_v51, 0.0  ;;  %v260_v60 = vsel %vm71_vm3, %v251_v54, 0.0  ;;  %v289_v19 = vmul.f32 %v286_v59, %v900_v5 }
  0xa4   :  { %v268_v2 = vmul.f32 %v1054_v55, %v259_v57  ;;  %v269_v20 = vmul.f32 %v1054_v55, %v260_v60 }
  0xa5   :  { %v1091_v37 = vpop.permute.xlu1 %323  ;;  %v249_v38 = vpop.permute.xlu0 %248  ;;  %v293_v47 = vcombine.high %v289_v19, %v289_v19 }
  0xa6   :  { %v252_v56 = vsel %vm1536_vm10, %v245_v34, %v249_v38  ;;  %v254_v14 = vsel %vm1536_vm10, %v249_v38, %v245_v34  ;;  %v272_v16 = vadd.f32 %v268_v2, %v238_v21  ;;  %v273_v23 = vadd.f32 %v269_v20, %v239_v22  ;;  %vm1148_vm10 = vmand %vm71_vm3, %vm1538_vm12 }
  0xa7   :  { %v261_v0 = vsel %vm70_vm1, %v254_v14, 0.0  ;;  %v262_v1 = vsel %vm71_vm3, %v252_v56, 0.0 }
  0xa8   :  { %v270_v4 = vmul.f32 %v1054_v55, %v261_v0  ;;  %v271_v9 = vmul.f32 %v1054_v55, %v262_v1  ;;  %v296_v48 = vadd.f32 %v288_v3, %v272_v16 }
  0xa9   :  { %v301_v40 = vpop.permute.xlu1 %300  ;;  %v1093_v41 = vpop.permute.xlu0 %357 }
  0xaa   :  { %v274_v30 = vadd.f32 %v270_v4, %v240_v35  ;;  %v275_v22 = vadd.f32 %v271_v9, %v241_v36 }
  0xac   :  { %v298_v0 = vadd.f32 %v289_v19, %v274_v30  ;;  %v299_v1 = vadd.f32 %v293_v47, %v275_v22 }
  0xad   :  { %v305_v44 = vpop.permute.xlu1 %304  ;;  %v303_v45 = vpop.permute.xlu0 %302 }
  0xae   :  { %v309_v18 = vsel %vm308_vm11, %v301_v40, %v305_v44  ;;  %v311_v10 = vsel %vm308_vm11, %v305_v44, %v301_v40 }
  0xaf   :  { %v317_v6 = vsel %vm100_vm6, %v309_v18, 0.0  ;;  %v318_v24 = vsel %vm101_vm8, %v311_v10, 0.0 }
  0xb0   :  { %v326_v38 = vmul.f32 %v1091_v37, %v317_v6  ;;  %v327_v44 = vmul.f32 %v1091_v37, %v318_v24 }
  0xb1   :  { %v1096_v49 = vpop.permute.xlu1 %391  ;;  %v307_v15 = vpop.permute.xlu0 %306 }
  0xb2   :  { %v310_v13 = vsel %vm308_vm11, %v303_v45, %v307_v15  ;;  %v312_v55 = vsel %vm308_vm11, %v307_v15, %v303_v45  ;;  %v297_v15 = vadd.f32 %v292_v29, %v273_v23 }
  0xb3   :  { %v319_v31 = vsel %vm100_vm6, %v310_v13, 0.0  ;;  %v320_v40 = vsel %vm101_vm8, %v312_v55, 0.0 }
  0xb4   :  { %v328_v50 = vmul.f32 %v1091_v37, %v319_v31  ;;  %v329_v51 = vmul.f32 %v1091_v37, %v320_v40 }
  0xb5   :  { %v337_v52 = vpop.permute.xlu1 %336  ;;  %v335_v53 = vpop.permute.xlu0 %334 }
  0xb6   :  { %v332_v9 = vadd.f32 %v328_v50, %v298_v0  ;;  %v333_v10 = vadd.f32 %v329_v51, %v299_v1 }
  0xb9   :  { %v341_v62 = vpop.permute.xlu1 %340  ;;  %v339_v63 = vpop.permute.xlu0 %338 }
  0xba   :  { %v343_v5 = vsel %vm1537_vm13, %v335_v53, %v339_v63  ;;  %v345_v21 = vsel %vm1537_vm13, %v339_v63, %v335_v53  ;;  %v344_v42 = vsel %vm1537_vm13, %v337_v52, %v341_v62  ;;  %v346_v35 = vsel %vm1537_vm13, %v341_v62, %v337_v52  ;;  %vm1196_vm13 = vmand %vm101_vm8, %vm1538_vm12 }
  0xbb   :  { %v351_v36 = vsel %vm70_vm1, %v343_v5, 0.0  ;;  %v352_v45 = vsel %vm1148_vm10, %v345_v21, 0.0  ;;  %v353_v53 = vsel %vm70_vm1, %v344_v42, 0.0  ;;  %v354_v57 = vsel %vm1148_vm10, %v346_v35, 0.0 }
  0xbc   :  { %v360_v59 = vmul.f32 %v1093_v41, %v351_v36  ;;  %v361_v60 = vmul.f32 %v1093_v41, %v352_v45  ;;  %v330_v62 = vadd.f32 %v326_v38, %v296_v48  ;;  %v331_v63 = vadd.f32 %v327_v44, %v297_v15 }
  0xbd   :  { %v369_v11 = vpop.permute.xlu1 %368  ;;  %v1131_v12 = vpop.permute.xlu0 %425  ;;  %v363_v13 = vmul.f32 %v1093_v41, %v354_v57 }
  0xbe   :  { %v364_v6 = vadd.f32 %v360_v59, %v330_v62  ;;  %v365_v55 = vadd.f32 %v361_v60, %v331_v63 }
  0xbf   :  { %v367_v38 = vadd.f32 %v363_v13, %v333_v10  ;;  %v30_v10 = vld [vmem:[%s1534_s2 + $0x8] sm:$0xf]  ;;  %v32_v13 = vld [vmem:[%s1534_s2 + $0x10] sm:$0xf] }
  0xc1   :  { %v373_v32 = vpop.permute.xlu1 %372  ;;  %v371_v34 = vpop.permute.xlu0 %370 }
  0xc2   :  { %v379_v43 = vsel %vm376_vm14, %v373_v32, %v369_v11  ;;  %v377_v54 = vsel %vm376_vm14, %v369_v11, %v373_v32  ;;  %v362_v11 = vmul.f32 %v1093_v41, %v353_v53 }
  0xc3   :  { %v386_v52 = vsel %vm1538_vm12, %v379_v43, 0.0  ;;  %v394_v2 = vmul.f32 %v1096_v49, %v377_v54 }
  0xc4   :  { %v395_v20 = vmul.f32 %v1096_v49, %v386_v52 }
  0xc5   :  { %v403_v56 = vpop.permute.xlu1 %402  ;;  %v375_v14 = vpop.permute.xlu0 %374  ;;  %v398_v30 = vadd.f32 %v394_v2, %v364_v6  ;;  %v33_v6 = vld [vmem:[%s1534_s2 + $0x14] sm:$0xf] }
  0xc6   :  { %v380_v37 = vsel %vm376_vm14, %v375_v14, %v371_v34  ;;  %v378_v18 = vsel %vm376_vm14, %v371_v34, %v375_v14  ;;  %v399_v22 = vadd.f32 %v395_v20, %v365_v55  ;;  %v366_v34 = vadd.f32 %v362_v11, %v332_v9  ;;  %v37_v9 = vld [vmem:[%s1533_s3] sm:$0xf]  ;;  %v29_v11 = vld [vmem:[%s1534_s2 + $0x4] sm:$0xf] }
  0xc7   :  { %v388_v3 = vsel %vm1538_vm12, %v380_v37, 0.0  ;;  %v396_v5 = vmul.f32 %v1096_v49, %v378_v18  ;;  %vm436_vm12 = vcmask 1043456   ;;  %v38_v18 = vld [vmem:[%s1533_s3 + $0x4] sm:$0xf]  ;;  %v36_v55 = vld [vmem:[%s1534_s2 + $0x20] sm:$0xf] }
  0xc8   :  { %v397_v21 = vmul.f32 %v1096_v49, %v388_v3  ;;  %v28_v3 = vld [vmem:[%s1534_s2] sm:$0xf] }
  0xc9   :  { %v407_v19 = vpop.permute.xlu1 %406  ;;  %v405_v16 = vpop.permute.xlu0 %404  ;;  %v400_v35 = vadd.f32 %v396_v5, %v366_v34 }
  0xca   :  { %v411_v23 = vsel %vm410_vm15, %v403_v56, %v407_v19  ;;  %v413_v24 = vsel %vm410_vm15, %v407_v19, %v403_v56  ;;  %v401_v36 = vadd.f32 %v397_v21, %v367_v38  ;;  %v31_v19 = vld [vmem:[%s1534_s2 + $0xc] sm:$0xf] }
  0xcb   :  { %v419_v29 = vsel %vm100_vm6, %v411_v23, 0.0  ;;  %v420_v41 = vsel %vm1196_vm13, %v413_v24, 0.0  ;;  %v35_v23 = vld [vmem:[%s1534_s2 + $0x1c] sm:$0xf] }
  0xcc   :  { %v428_v31 = vmul.f32 %v1131_v12, %v419_v29  ;;  %v429_v32 = vmul.f32 %v1131_v12, %v420_v41 }
  0xcd   :  { %v409_v40 = vpop.permute.xlu0 %408 }
  0xce   :  { %v1214_v42 = vadd.f32 %v428_v31, %v398_v30  ;;  %v1216_v43 = vadd.f32 %v429_v32, %v399_v22  ;;  %v412_v49 = vsel %vm410_vm15, %v405_v16, %v409_v40  ;;  %v414_v44 = vsel %vm410_vm15, %v409_v40, %v405_v16  ;;  %v34_v16 = vld [vmem:[%s1534_s2 + $0x18] sm:$0xf] }
  0xcf   :  { %v421_v45 = vsel %vm100_vm6, %v412_v49, 0.0  ;;  %v422_v47 = vsel %vm1196_vm13, %v414_v44, 0.0 }
  0xd0   :  { %v430_v48 = vmul.f32 %v1131_v12, %v421_v45  ;;  %v431_v15 = vmul.f32 %v1131_v12, %v422_v47  ;;  %v437_v50 = vsel %vm436_vm12, %v1214_v42, 0.0  ;;  %v438_v51 = vsel %vm436_vm12, %v1216_v43, 0.0 }
  0xd1   :  { %v439_v53 = vadd.f32 %v438_v51, %v437_v50  ;;  %v450_v56 = vmul.f32 %v1214_v42, %v1214_v42  ;;  %v451_v14 = vmul.f32 %v1216_v43, %v1216_v43 }
  0xd2   :  { %v1232_v54 = vadd.f32 %v430_v48, %v400_v35  ;;  %v1234_v52 = vadd.f32 %v431_v15, %v401_v36 }
  0xd3   :  { %440 = vadd.xlane.f32.xlu1 %v439_v53  ;;  %v454_v0 = vsel %vm436_vm12, %v450_v56, 0.0  ;;  %v455_v1 = vsel %vm436_vm12, %v451_v14, 0.0 }
  0xd4   :  { %v442_v12 = vsel %vm436_vm12, %v1232_v54, 0.0  ;;  %v443_v57 = vsel %vm436_vm12, %v1234_v52, 0.0  ;;  %v452_v59 = vmul.f32 %v1232_v54, %v1232_v54  ;;  %v453_v60 = vmul.f32 %v1234_v52, %v1234_v52 }
  0xd5   :  { %v444_v37 = vadd.f32 %v443_v57, %v442_v12  ;;  %v456_v20 = vadd.f32 %v455_v1, %v454_v0 }
  0xd6   :  { %v459_v62 = vsel %vm436_vm12, %v452_v59, 0.0  ;;  %v460_v63 = vsel %vm436_vm12, %v453_v60, 0.0 }
  0xd7   :  { %445 = vadd.xlane.f32.xlu0 %v444_v37  ;;  %v461_v2 = vadd.f32 %v460_v63, %v459_v62 }
  0xd9   :  { %462 = vadd.xlane.f32.xlu1 %v461_v2 }
  0xdb   :  { %457 = vadd.xlane.f32.xlu0 %v456_v20 }
  0xea   :  { %493 = vperm.xlu1 %841, %v38_v18  }
  0xee   :  { %522 = vperm.xlu1 %841, %v28_v3  }
  0xf1   :  { %484 = vperm.xlu0 %840, %v37_v9  }
  0xf2   :  { %576 = vperm.xlu1 %841, %v30_v10  }
  0xf5   :  { %547 = vperm.xlu0 %840, %v29_v11  }
  0xf6   :  { %618 = vperm.xlu1 %841, %v32_v13  }
  0xf9   :  { %605 = vperm.xlu0 %840, %v31_v19  }
  0xfa   :  { %676 = vperm.xlu1 %841, %v34_v16  }
  0xfd   :  { %647 = vperm.xlu0 %840, %v33_v6  }
  0xfe   :  { %734 = vperm.xlu1 %841, %v36_v55  }
 0x101   :  { %705 = vperm.xlu0 %840, %v35_v23  }
 0x15c   :  { %v441_v24 = vpop.xlane.xlu1 %440 }
 0x15d   :  { %v447_v21 = vsel %vm436_vm12, %v441_v24, 0.0 }
 0x160   :  { %v446_v5 = vpop.xlane.xlu0 %445 }
 0x161   :  { %v448_v29 = vsel %vm436_vm12, %v446_v5, 0.0 }
 0x162   :  { %v449_v41 = vadd.f32 %v448_v29, %v447_v21  ;;  %v463_v30 = vpop.xlane.xlu1 %462 }
 0x163   :  { %v465_v32 = vsel %vm436_vm12, %v463_v30, 0.0 }
 0x164   :  { %v467_v22 = vmul.f32 0.001953125, %v449_v41  ;;  %v458_v31 = vpop.xlane.xlu0 %457 }
 0x165   :  { %v464_v34 = vsel %vm436_vm12, %v458_v31, 0.0 }
 0x166   :  { %v466_v38 = vadd.f32 %v465_v32, %v464_v34  ;;  %v469_v40 = vmul.f32 %v467_v22, %v467_v22  ;;  %v494_v45 = vpop.permute.xlu1 %493  ;;  %v472_v48 = vsub.f32 %v1214_v42, %v467_v22  ;;  %v473_v15 = vsub.f32 %v1216_v43, %v467_v22 }
 0x167   :  { %v474_v50 = vsub.f32 %v1232_v54, %v467_v22  ;;  %v475_v51 = vsub.f32 %v1234_v52, %v467_v22 }
 0x168   :  { %v468_v49 = vmul.f32 0.001953125, %v466_v38 }
 0x16a   :  { %v470_v44 = vsub.f32 %v468_v49, %v469_v40  ;;  %v1289_v47 = vpop.permute.xlu1 %522 }
 0x16c   :  { %v471_v35 = vmax.f32 %v470_v44, 0.0  ;;  %v485_v59 = vpop.permute.xlu0 %484 }
 0x16e   :  { %v476_v36 = vadd.f32 1e-05, %v471_v35  ;;  %v1295_v60 = vpop.permute.xlu1 %576 }
 0x170   :  { %844 = vrsqrt.f32 %v476_v36  ;;  %v548_v19 = vpop.permute.xlu0 %547 }
 0x172   :  { %v619_v3 = vpop.permute.xlu1 %618 }
 0x174   :  { %v1337_v16 = vpop.permute.xlu0 %605 }
 0x176   :  { %v1339_v6 = vpop.permute.xlu1 %676 }
 0x178   :  { %v1341_v55 = vpop.permute.xlu0 %647 }
 0x17a   :  { %v1343_v23 = vpop.permute.xlu1 %734 }
 0x17c   :  { %v1345_v24 = vpop.permute.xlu0 %705 }
 0x17d   :  { %v845_v53 = vpop.eup %844 }
 0x17e   :  { %v478_v56 = vmul.f32 %v845_v53, %v472_v48  ;;  %v479_v14 = vmul.f32 %v845_v53, %v473_v15  ;;  %v480_v12 = vmul.f32 %v845_v53, %v474_v50  ;;  %v481_v57 = vmul.f32 %v845_v53, %v475_v51 }
 0x180   :  { %v487_v37 = vmul.f32 %v485_v59, %v478_v56  ;;  %v488_v62 = vmul.f32 %v485_v59, %v479_v14  ;;  %v489_v63 = vmul.f32 %v485_v59, %v480_v12  ;;  %v490_v0 = vmul.f32 %v485_v59, %v481_v57 }
 0x182   :  { %v496_v1 = vadd.f32 %v494_v45, %v487_v37  ;;  %v497_v42 = vadd.f32 %v494_v45, %v488_v62  ;;  %v498_v2 = vadd.f32 %v494_v45, %v489_v63  ;;  %v499_v43 = vadd.f32 %v494_v45, %v490_v0 }
 0x184   :  { %v500_v20 = vmax.f32 %v496_v1, 0.0  ;;  %v501_v54 = vmax.f32 %v497_v42, 0.0  ;;  %v502_v18 = vmax.f32 %v498_v2, 0.0  ;;  %v503_v52 = vmax.f32 %v499_v43, 0.0 }
 0x186   :  { %v1297_v9 = vmul.f32 %v619_v3, %v500_v20  ;;  %v1299_v10 = vmul.f32 %v619_v3, %v501_v54  ;;  %v1301_v11 = vmul.f32 %v619_v3, %v502_v18  ;;  %v1303_v13 = vmul.f32 %v619_v3, %v503_v52  ;;  %506 = vrot.lane.b32.xlu1 %v502_v18, %s851_s27 }
 0x187   :  { %504 = vrot.lane.b32.xlu0 %v500_v20, %s851_s27 }
 0x18a   :  { %510 = vrot.lane.b32.xlu1 %v503_v52, %s851_s27 }
 0x18b   :  { %508 = vrot.lane.b32.xlu0 %v501_v54, %s851_s27 }
 0x18e   :  { %531 = vrot.lane.b32.xlu1 %v502_v18, %s852_s28 }
 0x18f   :  { %529 = vrot.lane.b32.xlu0 %v500_v20, %s852_s28 }
 0x192   :  { %535 = vrot.lane.b32.xlu1 %v503_v52, %s852_s28 }
 0x193   :  { %533 = vrot.lane.b32.xlu0 %v501_v54, %s852_s28 }
 0x196   :  { %558 = vrot.lane.b32.xlu1 %v500_v20, %s853_s5 }
 0x197   :  { %560 = vrot.lane.b32.xlu0 %v502_v18, %s853_s5 }
 0x19a   :  { %562 = vrot.lane.b32.xlu1 %v501_v54, %s853_s5 }
 0x19b   :  { %564 = vrot.lane.b32.xlu0 %v503_v52, %s853_s5 }
 0x19e   :  { %589 = vrot.lane.b32.xlu1 %v502_v18, %s854_s6 }
 0x19f   :  { %587 = vrot.lane.b32.xlu0 %v500_v20, %s854_s6 }
 0x1a2   :  { %593 = vrot.lane.b32.xlu1 %v503_v52, %s854_s6 }
 0x1a3   :  { %591 = vrot.lane.b32.xlu0 %v501_v54, %s854_s6 }
 0x1a6   :  { %631 = vrot.lane.b32.xlu1 %v502_v18, %s855_s11 }
 0x1a7   :  { %629 = vrot.lane.b32.xlu0 %v500_v20, %s855_s11 }
 0x1aa   :  { %635 = vrot.lane.b32.xlu1 %v503_v52, %s855_s11 }
 0x1ab   :  { %633 = vrot.lane.b32.xlu0 %v501_v54, %s855_s11 }
 0x1ae   :  { %658 = vrot.lane.b32.xlu1 %v500_v20, %s856_s14 }
 0x1af   :  { %660 = vrot.lane.b32.xlu0 %v502_v18, %s856_s14 }
 0x1b2   :  { %662 = vrot.lane.b32.xlu1 %v501_v54, %s856_s14 }
 0x1b3   :  { %664 = vrot.lane.b32.xlu0 %v503_v52, %s856_s14 }
 0x1b6   :  { %689 = vrot.lane.b32.xlu1 %v502_v18, %s857_s17 }
 0x1b7   :  { %687 = vrot.lane.b32.xlu0 %v500_v20, %s857_s17 }
 0x1ba   :  { %693 = vrot.lane.b32.xlu1 %v503_v52, %s857_s17 }
 0x1bb   :  { %691 = vrot.lane.b32.xlu0 %v501_v54, %s857_s17 }
 0x1be   :  { %718 = vrot.lane.b32.xlu1 %v502_v18, %s858_s18 }
 0x1bf   :  { %716 = vrot.lane.b32.xlu0 %v500_v20, %s858_s18 }
 0x1c2   :  { %722 = vrot.lane.b32.xlu1 %v503_v52, %s858_s18 }
 0x1c3   :  { %720 = vrot.lane.b32.xlu0 %v501_v54, %s858_s18 }
 0x1f8   :  { %v507_v5 = vpop.permute.xlu1 %506 }
 0x1f9   :  { %v505_v21 = vpop.permute.xlu0 %504 }
 0x1fc   :  { %v511_v29 = vpop.permute.xlu1 %510 }
 0x1fd   :  { %v509_v41 = vpop.permute.xlu0 %508  ;;  %v513_v36 = vsel %vm152_vm0, %v507_v5, %v511_v29  ;;  %v515_v45 = vsel %vm152_vm0, %v511_v29, %v507_v5 }
 0x1fe   :  { %v512_v32 = vsel %vm152_vm0, %v505_v21, %v509_v41  ;;  %v514_v34 = vsel %vm152_vm0, %v509_v41, %v505_v21  ;;  %v518_v37 = vsel %vm1023_vm4, %v515_v45, 0.0  ;;  %v519_v62 = vsel %vm71_vm3, %v513_v36, 0.0 }
 0x1ff   :  { %v516_v48 = vsel %vm1023_vm4, %v514_v34, 0.0  ;;  %v517_v15 = vsel %vm71_vm3, %v512_v32, 0.0  ;;  %v527_v29 = vmul.f32 %v1289_v47, %v518_v37  ;;  %v528_v41 = vmul.f32 %v1289_v47, %v519_v62 }
 0x200   :  { %v532_v30 = vpop.permute.xlu1 %531  ;;  %v525_v57 = vmul.f32 %v1289_v47, %v516_v48  ;;  %v526_v59 = vmul.f32 %v1289_v47, %v517_v15  ;;  %vm1547_vm0 = vcmp.lt.s32.totalorder %v997_v17, 1 }
 0x201   :  { %v530_v22 = vpop.permute.xlu0 %529  ;;  %vm1549_vm4 = vmmov %vm1547_vm0 }
 0x204   :  { %v536_v31 = vpop.permute.xlu1 %535 }
 0x205   :  { %v534_v38 = vpop.permute.xlu0 %533  ;;  %v540_v40 = vsel %vm182_vm5, %v536_v31, %v532_v30  ;;  %v538_v51 = vsel %vm182_vm5, %v532_v30, %v536_v31 }
 0x206   :  { %v537_v49 = vsel %vm182_vm5, %v530_v22, %v534_v38  ;;  %v539_v44 = vsel %vm182_vm5, %v534_v38, %v530_v22  ;;  %v543_v53 = vsel %vm78_vm2, %v540_v40, 0.0  ;;  %v553_v0 = vmul.f32 %v548_v19, %v538_v51  ;;  %vm1550_vm5 = vmmov %vm1547_vm0 }
 0x207   :  { %v541_v35 = vsel %vm78_vm2, %v539_v44, 0.0  ;;  %v551_v14 = vmul.f32 %v548_v19, %v537_v49  ;;  %v552_v63 = vmul.f32 %v548_v19, %v543_v53  ;;  %vm1548_vm2 = vmmov %vm1547_vm0 }
 0x208   :  { %v559_v50 = vpop.permute.xlu1 %558  ;;  %v550_v56 = vmul.f32 %v548_v19, %v541_v35  ;;  %v557_v49 = vadd.f32 %v553_v0, %v528_v41 }
 0x209   :  { %v561_v12 = vpop.permute.xlu0 %560  ;;  %v555_v2 = vadd.f32 %v551_v14, %v526_v59  ;;  %v556_v40 = vadd.f32 %v552_v63, %v527_v29 }
 0x20a   :  { %v554_v42 = vadd.f32 %v550_v56, %v525_v57 }
 0x20c   :  { %v563_v1 = vpop.permute.xlu1 %562 }
 0x20d   :  { %v566_v26 = vsel %vm216_vm7, %v559_v50, %v563_v1  ;;  %v568_v43 = vsel %vm216_vm7, %v563_v1, %v559_v50  ;;  %v565_v20 = vpop.permute.xlu0 %564 }
 0x20e   :  { %v570_v54 = vsel %vm1067_vm9, %v568_v43, 0.0  ;;  %v571_v33 = vsel %vm101_vm8, %v566_v26, 0.0  ;;  %v567_v18 = vsel %vm216_vm7, %v561_v12, %v565_v20  ;;  %v569_v52 = vsel %vm216_vm7, %v565_v20, %v561_v12 }
 0x20f   :  { %v579_v3 = vmul.f32 %v1295_v60, %v570_v54  ;;  %v580_v19 = vmul.f32 %v1295_v60, %v571_v33  ;;  %v572_v5 = vsel %vm1067_vm9, %v569_v52, 0.0  ;;  %v573_v21 = vsel %vm101_vm8, %v567_v18, 0.0 }
 0x210   :  { %v590_v30 = vpop.permute.xlu1 %589  ;;  %v581_v32 = vmul.f32 %v1295_v60, %v572_v5  ;;  %v582_v34 = vmul.f32 %v1295_v60, %v573_v21 }
 0x211   :  { %v583_v22 = vadd.f32 %v579_v3, %v554_v42  ;;  %v584_v31 = vadd.f32 %v580_v19, %v555_v2  ;;  %v588_v38 = vpop.permute.xlu0 %587 }
 0x212   :  { %v585_v61 = vadd.f32 %v581_v32, %v556_v40  ;;  %v586_v35 = vadd.f32 %v582_v34, %v557_v49 }
 0x214   :  { %v594_v44 = vpop.permute.xlu1 %593 }
 0x215   :  { %v596_v36 = vsel %vm1547_vm0, %v590_v30, %v594_v44  ;;  %v598_v45 = vsel %vm1548_vm2, %v594_v44, %v590_v30  ;;  %v592_v47 = vpop.permute.xlu0 %591 }
 0x216   :  { %v601_v48 = vsel %vm70_vm1, %v598_v45, 0.0  ;;  %v602_v15 = vsel %vm71_vm3, %v596_v36, 0.0  ;;  %v595_v60 = vsel %vm1549_vm4, %v588_v38, %v592_v47  ;;  %v597_v50 = vsel %vm1550_vm5, %v592_v47, %v588_v38 }
 0x217   :  { %v610_v51 = vmul.f32 %v1337_v16, %v601_v48  ;;  %v611_v53 = vmul.f32 %v1337_v16, %v602_v15  ;;  %v599_v56 = vsel %vm70_vm1, %v597_v50, 0.0  ;;  %v600_v14 = vsel %vm71_vm3, %v595_v60, 0.0 }
 0x218   :  { %v608_v12 = vmul.f32 %v1337_v16, %v599_v56  ;;  %v609_v57 = vmul.f32 %v1337_v16, %v600_v14  ;;  %v632_v59 = vpop.permute.xlu1 %631  ;;  %vm1551_vm3 = vcmp.lt.s32.totalorder %v997_v17, 113 }
 0x219   :  { %v614_v37 = vadd.f32 %v610_v51, %v585_v61  ;;  %v615_v62 = vadd.f32 %v611_v53, %v586_v35  ;;  %v630_v63 = vpop.permute.xlu0 %629  ;;  %vm1552_vm7 = vmmov %vm1551_vm3 }
 0x21a   :  { %v612_v0 = vadd.f32 %v608_v12, %v583_v22  ;;  %v613_v1 = vadd.f32 %v609_v57, %v584_v31  ;;  %vm1554_vm9 = vmmov %vm1551_vm3 }
 0x21b   :  { %v627_v42 = vadd.f32 %v1301_v11, %v614_v37  ;;  %v628_v2 = vadd.f32 %v1303_v13, %v615_v62 }
 0x21c   :  { %v636_v26 = vpop.permute.xlu1 %635  ;;  %v625_v43 = vadd.f32 %v1297_v9, %v612_v0  ;;  %v626_v27 = vadd.f32 %v1299_v10, %v613_v1 }
 0x21d   :  { %v634_v20 = vpop.permute.xlu0 %633  ;;  %v638_v54 = vsel %vm308_vm11, %v632_v59, %v636_v26  ;;  %v640_v16 = vsel %vm308_vm11, %v636_v26, %v632_v59 }
 0x21e   :  { %v637_v33 = vsel %vm308_vm11, %v630_v63, %v634_v20  ;;  %v639_v11 = vsel %vm308_vm11, %v634_v20, %v630_v63  ;;  %v643_v3 = vsel %vm100_vm6, %v638_v54, 0.0  ;;  %v644_v19 = vsel %vm101_vm8, %v640_v16, 0.0 }
 0x21f   :  { %v641_v13 = vsel %vm100_vm6, %v637_v33, 0.0  ;;  %v642_v9 = vsel %vm101_vm8, %v639_v11, 0.0  ;;  %v652_v41 = vmul.f32 %v1341_v55, %v643_v3  ;;  %v653_v30 = vmul.f32 %v1341_v55, %v644_v19  ;;  %vm1553_vm8 = vmmov %vm1551_vm3 }
 0x220   :  { %v650_v10 = vmul.f32 %v1341_v55, %v641_v13  ;;  %v651_v18 = vmul.f32 %v1341_v55, %v642_v9  ;;  %v659_v52 = vpop.permute.xlu1 %658 }
 0x221   :  { %v661_v5 = vpop.permute.xlu0 %660  ;;  %v656_v36 = vadd.f32 %v652_v41, %v627_v42  ;;  %v657_v45 = vadd.f32 %v653_v30, %v628_v2 }
 0x222   :  { %v654_v21 = vadd.f32 %v650_v10, %v625_v43  ;;  %v655_v29 = vadd.f32 %v651_v18, %v626_v27 }
 0x224   :  { %v663_v22 = vpop.permute.xlu1 %662 }
 0x225   :  { %v666_v31 = vsel %vm1551_vm3, %v659_v52, %v663_v22  ;;  %v668_v32 = vsel %vm1552_vm7, %v663_v22, %v659_v52  ;;  %v665_v34 = vpop.permute.xlu0 %664 }
 0x226   :  { %v670_v38 = vsel %vm70_vm1, %v666_v31, 0.0  ;;  %v671_v46 = vsel %vm1148_vm10, %v668_v32, 0.0  ;;  %v667_v40 = vsel %vm1553_vm8, %v661_v5, %v665_v34  ;;  %v669_v55 = vsel %vm1554_vm9, %v665_v34, %v661_v5 }
 0x227   :  { %v679_v49 = vmul.f32 %v1339_v6, %v670_v38  ;;  %v680_v44 = vmul.f32 %v1339_v6, %v671_v46  ;;  %v672_v61 = vsel %vm70_vm1, %v667_v40, 0.0  ;;  %v673_v35 = vsel %vm1148_vm10, %v669_v55, 0.0 }
 0x228   :  { %v681_v47 = vmul.f32 %v1339_v6, %v672_v61  ;;  %v682_v48 = vmul.f32 %v1339_v6, %v673_v35  ;;  %v690_v15 = vpop.permute.xlu1 %689  ;;  %vm1555_vm1 = vcmp.lt.s32.totalorder %v1110_v58, 256 }
 0x229   :  { %v683_v60 = vadd.f32 %v679_v49, %v654_v21  ;;  %v684_v50 = vadd.f32 %v680_v44, %v655_v29  ;;  %v688_v51 = vpop.permute.xlu0 %687  ;;  %vm1556_vm10 = vmmov %vm1555_vm1 }
 0x22a   :  { %v685_v53 = vadd.f32 %v681_v47, %v656_v36  ;;  %v686_v56 = vadd.f32 %v682_v48, %v657_v45  ;;  %v39_v36 = vld [vmem:[%s1533_s3 + $0x8] sm:$0xf]  ;;  %v40_v45 = vld [vmem:[%s1533_s3 + $0xc] sm:$0xf] }
 0x22c   :  { %v694_v14 = vpop.permute.xlu1 %693 }
 0x22d   :  { %v698_v25 = vsel %vm376_vm14, %v694_v14, %v690_v15  ;;  %v692_v12 = vpop.permute.xlu0 %691  ;;  %v696_v28 = vsel %vm376_vm14, %v690_v15, %v694_v14 }
 0x22e   :  { %v702_v57 = vsel %vm1555_vm1, %v698_v25, 0.0  ;;  %v695_v6 = vsel %vm376_vm14, %v688_v51, %v692_v12  ;;  %v697_v59 = vsel %vm376_vm14, %v692_v12, %v688_v51  ;;  %v710_v1 = vmul.f32 %v1345_v24, %v696_v28 }
 0x22f   :  { %v700_v37 = vsel %vm1556_vm10, %v697_v59, 0.0  ;;  %v708_v62 = vmul.f32 %v1345_v24, %v695_v6  ;;  %v711_v42 = vmul.f32 %v1345_v24, %v702_v57 }
 0x230   :  { %v709_v63 = vmul.f32 %v1345_v24, %v700_v37  ;;  %v719_v0 = vpop.permute.xlu1 %718  ;;  %v714_v20 = vadd.f32 %v710_v1, %v685_v53 }
 0x231   :  { %v712_v2 = vadd.f32 %v708_v62, %v683_v60  ;;  %v717_v26 = vpop.permute.xlu0 %716  ;;  %v715_v54 = vadd.f32 %v711_v42, %v686_v56 }
 0x232   :  { %v713_v43 = vadd.f32 %v709_v63, %v684_v50 }
 0x234   :  { %v723_v27 = vpop.permute.xlu1 %722 }
 0x235   :  { %v725_v16 = vsel %vm410_vm15, %v719_v0, %v723_v27  ;;  %v727_v58 = vsel %vm410_vm15, %v723_v27, %v719_v0  ;;  %v721_v33 = vpop.permute.xlu0 %720 }
 0x236   :  { %v730_v11 = vsel %vm100_vm6, %v725_v16, 0.0  ;;  %v731_v13 = vsel %vm1196_vm13, %v727_v58, 0.0  ;;  %v724_v24 = vsel %vm410_vm15, %v717_v26, %v721_v33  ;;  %v726_v9 = vsel %vm410_vm15, %v721_v33, %v717_v26 }
 0x237   :  { %v739_v10 = vmul.f32 %v1343_v23, %v730_v11  ;;  %v740_v18 = vmul.f32 %v1343_v23, %v731_v13  ;;  %v728_v52 = vsel %vm100_vm6, %v724_v24, 0.0  ;;  %v729_v3 = vsel %vm1196_vm13, %v726_v9, 0.0 }
 0x238   :  { %v737_v19 = vmul.f32 %v1343_v23, %v728_v52  ;;  %v738_v5 = vmul.f32 %v1343_v23, %v729_v3 }
 0x239   :  { %v743_v21 = vadd.f32 %v739_v10, %v714_v20  ;;  %v744_v29 = vadd.f32 %v740_v18, %v715_v54  ;;  %v848_v18 = vld [vmem:[%s1532_s0] sm:$0xff] }
 0x23a   :  { %v741_v41 = vadd.f32 %v737_v19, %v712_v2  ;;  %v742_v30 = vadd.f32 %v738_v5, %v713_v43  ;;  %v849_v19 = vld [vmem:[%s1532_s0 + $0x8] sm:$0xff] }
 0x23b   :  { %v750_v17 = vsel %vm436_vm12, %v743_v21, 0.0  ;;  %v751_v22 = vsel %vm436_vm12, %v744_v29, 0.0  ;;  %v760_v23 = vmul.f32 %v743_v21, %v743_v21  ;;  %v761_v40 = vmul.f32 %v744_v29, %v744_v29 }
 0x23c   :  { %v752_v31 = vadd.f32 %v751_v22, %v750_v17  ;;  %v745_v32 = vsel %vm436_vm12, %v741_v41, 0.0  ;;  %v746_v39 = vsel %vm436_vm12, %v742_v30, 0.0  ;;  %v758_v34 = vmul.f32 %v741_v41, %v741_v41 }
 0x23d   :  { %v747_v4 = vadd.f32 %v746_v39, %v745_v32  ;;  %v759_v38 = vmul.f32 %v742_v30, %v742_v30  ;;  %v767_v44 = vsel %vm436_vm12, %v760_v23, 0.0  ;;  %v768_v61 = vsel %vm436_vm12, %v761_v40, 0.0 }
 0x23e   :  { %753 = vadd.xlane.f32.xlu1 %v752_v31  ;;  %v762_v46 = vsel %vm436_vm12, %v758_v34, 0.0  ;;  %v769_v35 = vadd.f32 %v768_v61, %v767_v44 }
 0x23f   :  { %748 = vadd.xlane.f32.xlu0 %v747_v4  ;;  %v763_v55 = vsel %vm436_vm12, %v759_v38, 0.0 }
 0x240   :  { %v764_v49 = vadd.f32 %v763_v55, %v762_v46 }
 0x243   :  { %765 = vadd.xlane.f32.xlu0 %v764_v49 }
 0x247   :  { %770 = vadd.xlane.f32.xlu0 %v769_v35 }
 0x24f   :  { %792 = vperm.xlu1 %841, %v39_v36  }
 0x25d   :  { %801 = vperm.xlu0 %840, %v40_v45  }
 0x2c7   :  { %v754_v47 = vpop.xlane.xlu1 %753 }
 0x2c8   :  { %v749_v48 = vpop.xlane.xlu0 %748  ;;  %v756_v15 = vsel %vm436_vm12, %v754_v47, 0.0 }
 0x2c9   :  { %v755_v60 = vsel %vm436_vm12, %v749_v48, 0.0 }
 0x2ca   :  { %v757_v50 = vadd.f32 %v756_v15, %v755_v60 }
 0x2cb   :  { %v793_v20 = vpop.permute.xlu1 %792 }
 0x2cc   :  { %v766_v51 = vpop.xlane.xlu0 %765  ;;  %v775_v53 = vmul.f32 0.001953125, %v757_v50 }
 0x2cd   :  { %v772_v14 = vsel %vm436_vm12, %v766_v51, 0.0 }
 0x2ce   :  { %v777_v28 = vmul.f32 %v775_v53, %v775_v53  ;;  %v780_v62 = vsub.f32 %v741_v41, %v775_v53  ;;  %v781_v63 = vsub.f32 %v742_v30, %v775_v53  ;;  %v782_v0 = vsub.f32 %v743_v21, %v775_v53 }
 0x2cf   :  { %v783_v1 = vsub.f32 %v744_v29, %v775_v53 }
 0x2d0   :  { %v771_v56 = vpop.xlane.xlu0 %770 }
 0x2d1   :  { %v773_v25 = vsel %vm436_vm12, %v771_v56, 0.0 }
 0x2d2   :  { %v774_v12 = vadd.f32 %v773_v25, %v772_v14 }
 0x2d4   :  { %v776_v57 = vmul.f32 0.001953125, %v774_v12 }
 0x2d6   :  { %v778_v6 = vsub.f32 %v776_v57, %v777_v28 }
 0x2d8   :  { %v779_v59 = vmax.f32 %v778_v6, 0.0  ;;  %v802_v11 = vpop.permute.xlu0 %801 }
 0x2da   :  { %v784_v37 = vadd.f32 1e-05, %v779_v59 }
 0x2dc   :  { %846 = vrsqrt.f32 %v784_v37 }
 0x2e9   :  { %v847_v42 = vpop.eup %846 }
 0x2ea   :  { %v786_v2 = vmul.f32 %v847_v42, %v780_v62  ;;  %v787_v26 = vmul.f32 %v847_v42, %v781_v63  ;;  %v788_v43 = vmul.f32 %v847_v42, %v782_v0  ;;  %v789_v27 = vmul.f32 %v847_v42, %v783_v1 }
 0x2ec   :  { %v795_v54 = vmul.f32 %v793_v20, %v786_v2  ;;  %v796_v16 = vmul.f32 %v793_v20, %v787_v26  ;;  %v797_v58 = vmul.f32 %v793_v20, %v788_v43  ;;  %v798_v33 = vmul.f32 %v793_v20, %v789_v27 }
 0x2ee   :  { %v804_v13 = vadd.f32 %v802_v11, %v795_v54  ;;  %v805_v24 = vadd.f32 %v802_v11, %v796_v16  ;;  %v806_v9 = vadd.f32 %v802_v11, %v797_v58  ;;  %v807_v10 = vadd.f32 %v802_v11, %v798_v33 }
 0x2f0   :  { %v808_v52 = vadd.f32 %v848_v18, %v804_v13  ;;  %v809_v3 = vadd.f32 %v805_v24, %v917_v8  ;;  %v810_v5 = vadd.f32 %v849_v19, %v806_v9  ;;  %v811_v21 = vadd.f32 %v807_v10, %v913_v7 }
 0x2f2   :  { %v812_v29 = vmax.f32 %v808_v52, 0.0  ;;  %v813_v41 = vmax.f32 %v809_v3, 0.0  ;;  %v814_v30 = vmax.f32 %v810_v5, 0.0  ;;  %v815_v17 = vmax.f32 %v811_v21, 0.0 }
 0x2f4   :  { %v820_v22 = vcombine.low %v812_v29, %v813_v41  ;;  %v821_v31 = vcombine.low %v814_v30, %v815_v17 }
 0x2f6   :  { %824 = vst [vmem:[%s1535_s4] sm:$0xff] %v820_v22  ;;  %825 = vst [vmem:[%s1535_s4 + $0x8] sm:$0xff] %v821_v31 }

</bundles_post_ra>
